<compile_context>
chip_gen: v7x
topology: tpu7x:2x2x1
jax: 0.10.0
libtpu: 0.0.40
codegen_flags: <defaults>
</compile_context>

<pallas_src>
import functools

import jax
import jax.numpy as jnp
from jax import lax
from jax.experimental import pallas as pl
from jax.experimental.pallas import tpu as pltpu

EPS = 1e-5
MXU_PREC = lax.Precision.HIGHEST


def _relu(x):
    return jnp.maximum(x, 0.0)


def ann_kernel(
    x_ref,                      # (tile_b, in_dim)   streamed batch tile
    w_in_ref, b_in_ref,         # (in_dim, 32), (1, 32)
    w1_ref, b1_ref,             # (32, 64),     (1, 64)
    w2_ref, b2_ref,             # (64, 32),     (1, 32)
    w_out_ref, b_out_ref,       # (32, out),    (1, out)
    g32_ref, be32_ref,          # (1, 32)
    g64_ref, be64_ref,          # (1, 64)
    o_ref,                      # (tile_b, out)
    h_buf,                      # VMEM scratch (bp, 32): holds pre-BN h1, later h3n
    *, b_true, tile_b,
):
    p = pl.program_id(0)        # phase: 0 = stream x / layer 1, 1 = rest
    i = pl.program_id(1)        # batch tile index
    bp = h_buf.shape[0]

    start = i * tile_b
    if tile_b % 8 == 0:
        start = pl.multiple_of(start, 8)

    # ---------- phase 0: layer 1 on the streamed tile, park pre-BN h1 ----------
    @pl.when(p == 0)
    def _():
        x = x_ref[...]
        h = jnp.dot(x, w_in_ref[...], precision=MXU_PREC,
                    preferred_element_type=jnp.float32)
        h = _relu(h + b_in_ref[...])
        # Rows past the true batch (OOB reads in the ragged last tile) can be
        # arbitrary garbage (even NaN/Inf).  Zero them here so the masked BN
        # statistics below stay finite.  Tiny (tile_b, 32) select -> negligible.
        row = lax.broadcasted_iota(jnp.int32, (tile_b, 1), 0) + i * tile_b
        h = jnp.where(row < b_true, h, 0.0)
        h_buf[pl.ds(start, tile_b), :] = h

    # ---------- phase 1, first step only: exact training-mode BN + layers 2..3
    #            over the full resident batch (only 32/64 features wide) ----------
    @pl.when(jnp.logical_and(p == 1, i == 0))
    def _():
        # (1, bp) validity mask row: excludes padded/garbage rows from stats.
        valid = (lax.broadcasted_iota(jnp.int32, (1, bp), 1)
                 < b_true).astype(jnp.float32)
        inv_b = jnp.float32(1.0 / b_true)

        def bn(h, gamma, beta):
            # Two-pass (mean-subtracted) variance; mask folded into MXU matvecs
            # so the cross-batch reductions run on the MXU, not the XLU.
            mean = jnp.dot(valid, h, precision=MXU_PREC,
                           preferred_element_type=jnp.float32) * inv_b
            d = h - mean
            var = jnp.dot(valid, d * d, precision=MXU_PREC,
                          preferred_element_type=jnp.float32) * inv_b
            scale = lax.rsqrt(var + EPS) * gamma
            return d * scale + beta

        h1 = bn(h_buf[...], g32_ref[...], be32_ref[...])
        h2 = _relu(jnp.dot(h1, w1_ref[...], precision=MXU_PREC,
                           preferred_element_type=jnp.float32) + b1_ref[...])
        h2 = bn(h2, g64_ref[...], be64_ref[...])
        h3 = _relu(jnp.dot(h2, w2_ref[...], precision=MXU_PREC,
                           preferred_element_type=jnp.float32) + b2_ref[...])
        # Third BN reuses bnorm32's gamma/beta (same module applied twice),
        # exactly as in the PyTorch forward.  Padded rows carry finite garbage
        # but are excluded from stats and masked off at the output store.
        h_buf[...] = bn(h3, g32_ref[...], be32_ref[...])

    # ---------- phase 1, every step: output layer for this batch tile ----------
    @pl.when(p == 1)
    def _():
        h = h_buf[pl.ds(start, tile_b), :]
        o_ref[...] = (jnp.dot(h, w_out_ref[...], precision=MXU_PREC,
                              preferred_element_type=jnp.float32)
                      + b_out_ref[...])


def _default_tile_b(batch):
    if batch < 8:
        return batch
    return min(512, (batch // 8) * 8)


def ann_forward(x, params, *, tile_b=None):
    """x: (B, input_dim) float32 -> (B, output_dim) float32."""
    B, in_dim = x.shape
    out_dim = params["w_out"].shape[1]

    if tile_b is None:
        tile_b = _default_tile_b(B)
    assert tile_b == B or tile_b % 8 == 0, "tile_b must be a multiple of 8 (or == B)"
    num_tiles = pl.cdiv(B, tile_b)
    bp = num_tiles * tile_b          # resident (padded) batch length

    def x_index_map(p, i):
        # Phase 0 streams batch tiles; phase 1 pins the index so no x block is
        # re-fetched (Pallas only re-DMAs when the block index changes).
        return (jnp.where(p == 0, i, num_tiles - 1), 0)

    def out_index_map(p, i):
        # Park on block 0 during phase 0 (never written there), write each tile
        # exactly once during phase 1 -> no garbage write-backs / revisits.
        return (jnp.where(p == 0, 0, i), 0)

    vmem = pl.BlockSpec(memory_space=pltpu.MemorySpace.VMEM)
    args = (
        x,
        params["w_in"], params["b_in"],
        params["w1"], params["b1"],
        params["w2"], params["b2"],
        params["w_out"], params["b_out"],
        params["g32"], params["be32"],
        params["g64"], params["be64"],
    )

    # Generation-aware scoped-VMEM limit (64 MiB physical on v7x, 128 MiB on
    # v5e/v6e) instead of a hard-coded 32 MiB.
    try:
        vmem_limit = int(pltpu.get_tpu_info().vmem_capacity_bytes) * 3 // 4
    except Exception:  # pragma: no cover - conservative fallback
        vmem_limit = 64 * 1024 * 1024

    flops = 2 * B * (in_dim * 32 + 32 * 64 + 64 * 32 + 32 * out_dim)
    param_bytes = sum(int(a.size) * 4 for a in args[1:])
    bytes_accessed = 4 * B * (in_dim + out_dim) + param_bytes
    cost = pl.CostEstimate(flops=flops, transcendentals=128,
                           bytes_accessed=bytes_accessed)

    return pl.pallas_call(
        functools.partial(ann_kernel, b_true=B, tile_b=tile_b),
        grid=(2, num_tiles),
        in_specs=[pl.BlockSpec((tile_b, in_dim), x_index_map)] + [vmem] * 12,
        out_specs=pl.BlockSpec((tile_b, out_dim), out_index_map),
        out_shape=jax.ShapeDtypeStruct((B, out_dim), jnp.float32),
        scratch_shapes=[pltpu.VMEM((bp, 32), jnp.float32)],
        compiler_params=pltpu.CompilerParams(
            dimension_semantics=("arbitrary", "arbitrary"),
            vmem_limit_bytes=vmem_limit,
        ),
        cost_estimate=cost,
    )(*args)


def init_params(key, input_dim, output_dim):
    """PyTorch nn.Linear-style uniform init.  Weights stored (in, out) so every
    layer is a canonical MXU matmul; biases / BN params stored as (1, F) rows."""

    def linear(k, fan_in, fan_out):
        k1, k2 = jax.random.split(k)
        bound = 1.0 / (fan_in ** 0.5)
        w = jax.random.uniform(k1, (fan_in, fan_out), jnp.float32, -bound, bound)
        b = jax.random.uniform(k2, (1, fan_out), jnp.float32, -bound, bound)
        return w, b

    ks = jax.random.split(key, 4)
    w_in, b_in = linear(ks[0], input_dim, 32)
    w1, b1 = linear(ks[1], 32, 64)
    w2, b2 = linear(ks[2], 64, 32)
    w_out, b_out = linear(ks[3], 32, output_dim)

    return dict(
        w_in=w_in, b_in=b_in, w1=w1, b1=b1, w2=w2, b2=b2,
        w_out=w_out, b_out=b_out,
        # BatchNorm affine params (PyTorch default init: gamma=1, beta=0)
        g32=jnp.ones((1, 32), jnp.float32), be32=jnp.zeros((1, 32), jnp.float32),
        g64=jnp.ones((1, 64), jnp.float32), be64=jnp.zeros((1, 64), jnp.float32),
    )


def reference_forward(x, params):
    """Pure-JAX reference (training-mode BN, biased variance, eps=1e-5)."""

    def bn(h, g, b):
        m = jnp.mean(h, axis=0, keepdims=True)
        v = jnp.mean((h - m) ** 2, axis=0, keepdims=True)
        return (h - m) * lax.rsqrt(v + EPS) * g + b

    def lin(h, w, b):
        return jnp.dot(h, w, precision=MXU_PREC) + b

    h = jnp.maximum(lin(x, params["w_in"], params["b_in"]), 0.0)
    h = bn(h, params["g32"], params["be32"])
    h = jnp.maximum(lin(h, params["w1"], params["b1"]), 0.0)
    h = bn(h, params["g64"], params["be64"])
    h = jnp.maximum(lin(h, params["w2"], params["b2"]), 0.0)
    h = bn(h, params["g32"], params["be32"])     # bnorm32 reused, as in PyTorch
    return lin(h, params["w_out"], params["b_out"])


if __name__ == "__main__":
    key = jax.random.PRNGKey(0)
    k1, k2, k3 = jax.random.split(key, 3)

    # Small shapes consistent with the module: batch=8, input_dim=16, output_dim=8
    B, input_dim, output_dim = 8, 16, 8
    params = init_params(k2, input_dim, output_dim)

    x = jax.random.normal(k1, (B, input_dim), jnp.float32)
    out = jax.block_until_ready(ann_forward(x, params))
    ref = reference_forward(x, params)
    assert out.shape == (B, output_dim)
    assert jnp.allclose(out, ref, atol=1e-4, rtol=1e-4), "mismatch vs reference (B=8)"

    # Also exercise the streamed multi-tile path with a ragged last tile.
    B2 = 20
    x2 = jax.random.normal(k3, (B2, input_dim), jnp.float32)
    out2 = jax.block_until_ready(ann_forward(x2, params, tile_b=8))
    ref2 = reference_forward(x2, params)
    assert out2.shape == (B2, output_dim)
    assert jnp.allclose(out2, ref2, atol=1e-4, rtol=1e-4), "mismatch vs reference (B=20)"

    print("KERNEL_OK")
</pallas_src>

<mosaic_0001>
module attributes {stable_mosaic.version = 11 : i64} {
  func.func @ann_kernel(%arg0: i32, %arg1: i32, %arg2: memref<8x16xf32, #tpu.memory_space<vmem>>, %arg3: memref<16x32xf32, #tpu.memory_space<vmem>>, %arg4: memref<1x32xf32, #tpu.memory_space<vmem>>, %arg5: memref<32x64xf32, #tpu.memory_space<vmem>>, %arg6: memref<1x64xf32, #tpu.memory_space<vmem>>, %arg7: memref<64x32xf32, #tpu.memory_space<vmem>>, %arg8: memref<1x32xf32, #tpu.memory_space<vmem>>, %arg9: memref<32x8xf32, #tpu.memory_space<vmem>>, %arg10: memref<1x8xf32, #tpu.memory_space<vmem>>, %arg11: memref<1x32xf32, #tpu.memory_space<vmem>>, %arg12: memref<1x32xf32, #tpu.memory_space<vmem>>, %arg13: memref<1x64xf32, #tpu.memory_space<vmem>>, %arg14: memref<1x64xf32, #tpu.memory_space<vmem>>, %arg15: memref<8x8xf32, #tpu.memory_space<vmem>>, %arg16: memref<8x32xf32, #tpu.memory_space<vmem>>) attributes {dimension_semantics = [#tpu.dimension_semantics<arbitrary>, #tpu.dimension_semantics<arbitrary>], iteration_bounds = array<i64: 2, 1>, scalar_prefetch = 0 : i64, scratch_operands = 1 : i64, tpu.core_type = #tpu.core_type<tc>, window_params = [{transform_indices = @transform_0, window_bounds = array<i64: 8, 16>}, {pipeline_mode = #tpu.pipeline_mode<synchronous>, transform_indices = @transform_1, window_bounds = array<i64: 16, 32>}, {pipeline_mode = #tpu.pipeline_mode<synchronous>, transform_indices = @transform_2, window_bounds = array<i64: 1, 32>}, {pipeline_mode = #tpu.pipeline_mode<synchronous>, transform_indices = @transform_3, window_bounds = array<i64: 32, 64>}, {pipeline_mode = #tpu.pipeline_mode<synchronous>, transform_indices = @transform_4, window_bounds = array<i64: 1, 64>}, {pipeline_mode = #tpu.pipeline_mode<synchronous>, transform_indices = @transform_5, window_bounds = array<i64: 64, 32>}, {pipeline_mode = #tpu.pipeline_mode<synchronous>, transform_indices = @transform_6, window_bounds = array<i64: 1, 32>}, {pipeline_mode = #tpu.pipeline_mode<synchronous>, transform_indices = @transform_7, window_bounds = array<i64: 32, 8>}, {pipeline_mode = #tpu.pipeline_mode<synchronous>, transform_indices = @transform_8, window_bounds = array<i64: 1, 8>}, {pipeline_mode = #tpu.pipeline_mode<synchronous>, transform_indices = @transform_9, window_bounds = array<i64: 1, 32>}, {pipeline_mode = #tpu.pipeline_mode<synchronous>, transform_indices = @transform_10, window_bounds = array<i64: 1, 32>}, {pipeline_mode = #tpu.pipeline_mode<synchronous>, transform_indices = @transform_11, window_bounds = array<i64: 1, 64>}, {pipeline_mode = #tpu.pipeline_mode<synchronous>, transform_indices = @transform_12, window_bounds = array<i64: 1, 64>}, {transform_indices = @transform_13, window_bounds = array<i64: 8, 8>}]} {
    %c8_i32 = arith.constant 8 : i32
    %0 = arith.muli %arg1, %c8_i32 : i32
    %1 = tpu.assume_multiple %0, 8 : i32
    %c0_i32 = arith.constant 0 : i32
    %2 = arith.cmpi eq, %arg0, %c0_i32 : i32
    %3 = arith.extui %2 : i1 to i32
    %c0_i32_0 = arith.constant 0 : i32
    %4 = arith.cmpi ne, %3, %c0_i32_0 : i32
    scf.if %4 {
      %c0 = arith.constant 0 : index
      %c0_5 = arith.constant 0 : index
      %13 = vector.load %arg2[%c0, %c0_5] : memref<8x16xf32, #tpu.memory_space<vmem>>, vector<8x16xf32>
      %c0_6 = arith.constant 0 : index
      %c0_7 = arith.constant 0 : index
      %14 = vector.load %arg3[%c0_6, %c0_7] : memref<16x32xf32, #tpu.memory_space<vmem>>, vector<16x32xf32>
      %cst = arith.constant dense<0.000000e+00> : vector<8x32xf32>
      %15 = tpu.matmul %13, %14, %cst {dimension_numbers = #tpu.dot_dimension_numbers<[1], [0], [0], [1], [0, 0, 1, 1], [], []>, precision = #tpu.contract_precision<fp32>} : vector<8x16xf32>, vector<16x32xf32>, vector<8x32xf32> -> vector<8x32xf32>
      %c0_8 = arith.constant 0 : index
      %c0_9 = arith.constant 0 : index
      %16 = vector.load %arg4[%c0_8, %c0_9] : memref<1x32xf32, #tpu.memory_space<vmem>>, vector<1x32xf32>
      %17 = vector.broadcast %16 : vector<1x32xf32> to vector<8x32xf32>
      %18 = arith.addf %15, %17 : vector<8x32xf32>
      %cst_10 = arith.constant 0.000000e+00 : f32
      %19 = vector.broadcast %cst_10 : f32 to vector<8x32xf32>
      %20 = arith.maximumf %18, %19 : vector<8x32xf32>
      %21 = tpu.iota {dimensions = array<i32: 0>} : vector<8x1xi32>
      %c8_i32_11 = arith.constant 8 : i32
      %22 = arith.muli %arg1, %c8_i32_11 : i32
      %23 = vector.broadcast %22 : i32 to vector<8x1xi32>
      %24 = arith.addi %21, %23 : vector<8x1xi32>
      %c8_i32_12 = arith.constant 8 : i32
      %25 = vector.broadcast %c8_i32_12 : i32 to vector<8x1xi32>
      %26 = arith.cmpi slt, %24, %25 : vector<8x1xi32>
      %cst_13 = arith.constant 0.000000e+00 : f32
      %27 = vector.shape_cast %26 : vector<8x1xi1> to vector<8x1xi1>
      %28 = vector.broadcast %27 : vector<8x1xi1> to vector<8x32xi1>
      %29 = vector.broadcast %cst_13 : f32 to vector<8x32xf32>
      %30 = arith.select %28, %20, %29 : vector<8x32xi1>, vector<8x32xf32>
      %31 = arith.index_cast %1 : i32 to index
      %c0_14 = arith.constant 0 : index
      %32 = vector.load %arg16[%31, %c0_14] : memref<8x32xf32, #tpu.memory_space<vmem>>, vector<8x32xf32>
      tpu.vector_store %arg16[%31, %c0_14], %30 {strides = array<i32>} : memref<8x32xf32, #tpu.memory_space<vmem>>, vector<8x32xf32>,
    } else {
    }
    %c1_i32 = arith.constant 1 : i32
    %5 = arith.cmpi eq, %arg0, %c1_i32 : i32
    %c0_i32_1 = arith.constant 0 : i32
    %6 = arith.cmpi eq, %arg1, %c0_i32_1 : i32
    %7 = arith.andi %5, %6 : i1
    %8 = arith.extui %7 : i1 to i32
    %c0_i32_2 = arith.constant 0 : i32
    %9 = arith.cmpi ne, %8, %c0_i32_2 : i32
    scf.if %9 {
      %13 = tpu.iota {dimensions = array<i32: 1>} : vector<1x8xi32>
      %c8_i32_5 = arith.constant 8 : i32
      %14 = vector.broadcast %c8_i32_5 : i32 to vector<1x8xi32>
      %15 = arith.cmpi slt, %13, %14 : vector<1x8xi32>
      %16 = arith.extui %15 : vector<1x8xi1> to vector<1x8xi32>
      %17 = arith.sitofp %16 : vector<1x8xi32> to vector<1x8xf32>
      %c0 = arith.constant 0 : index
      %c0_6 = arith.constant 0 : index
      %18 = vector.load %arg16[%c0, %c0_6] : memref<8x32xf32, #tpu.memory_space<vmem>>, vector<8x32xf32>
      %c0_7 = arith.constant 0 : index
      %c0_8 = arith.constant 0 : index
      %19 = vector.load %arg11[%c0_7, %c0_8] : memref<1x32xf32, #tpu.memory_space<vmem>>, vector<1x32xf32>
      %c0_9 = arith.constant 0 : index
      %c0_10 = arith.constant 0 : index
      %20 = vector.load %arg12[%c0_9, %c0_10] : memref<1x32xf32, #tpu.memory_space<vmem>>, vector<1x32xf32>
      %cst = arith.constant dense<0.000000e+00> : vector<1x32xf32>
      %21 = tpu.matmul %17, %18, %cst {dimension_numbers = #tpu.dot_dimension_numbers<[1], [0], [0], [1], [0, 0, 1, 1], [], []>, precision = #tpu.contract_precision<fp32>} : vector<1x8xf32>, vector<8x32xf32>, vector<1x32xf32> -> vector<1x32xf32>
      %cst_11 = arith.constant 1.250000e-01 : f32
      %22 = vector.broadcast %cst_11 : f32 to vector<1x32xf32>
      %23 = arith.mulf %21, %22 : vector<1x32xf32>
      %24 = vector.broadcast %23 : vector<1x32xf32> to vector<8x32xf32>
      %25 = arith.subf %18, %24 : vector<8x32xf32>
      %26 = arith.mulf %25, %25 : vector<8x32xf32>
      %cst_12 = arith.constant dense<0.000000e+00> : vector<1x32xf32>
      %27 = tpu.matmul %17, %26, %cst_12 {dimension_numbers = #tpu.dot_dimension_numbers<[1], [0], [0], [1], [0, 0, 1, 1], [], []>, precision = #tpu.contract_precision<fp32>} : vector<1x8xf32>, vector<8x32xf32>, vector<1x32xf32> -> vector<1x32xf32>
      %cst_13 = arith.constant 1.250000e-01 : f32
      %28 = vector.broadcast %cst_13 : f32 to vector<1x32xf32>
      %29 = arith.mulf %27, %28 : vector<1x32xf32>
      %cst_14 = arith.constant 9.99999974E-6 : f32
      %30 = vector.broadcast %cst_14 : f32 to vector<1x32xf32>
      %31 = arith.addf %29, %30 : vector<1x32xf32>
      %32 = math.rsqrt %31 : vector<1x32xf32>
      %33 = arith.mulf %32, %19 : vector<1x32xf32>
      %34 = vector.broadcast %33 : vector<1x32xf32> to vector<8x32xf32>
      %35 = arith.mulf %25, %34 : vector<8x32xf32>
      %36 = vector.broadcast %20 : vector<1x32xf32> to vector<8x32xf32>
      %37 = arith.addf %35, %36 : vector<8x32xf32>
      %c0_15 = arith.constant 0 : index
      %c0_16 = arith.constant 0 : index
      %38 = vector.load %arg5[%c0_15, %c0_16] : memref<32x64xf32, #tpu.memory_space<vmem>>, vector<32x64xf32>
      %cst_17 = arith.constant dense<0.000000e+00> : vector<8x64xf32>
      %39 = tpu.matmul %37, %38, %cst_17 {dimension_numbers = #tpu.dot_dimension_numbers<[1], [0], [0], [1], [0, 0, 1, 1], [], []>, precision = #tpu.contract_precision<fp32>} : vector<8x32xf32>, vector<32x64xf32>, vector<8x64xf32> -> vector<8x64xf32>
      %c0_18 = arith.constant 0 : index
      %c0_19 = arith.constant 0 : index
      %40 = vector.load %arg6[%c0_18, %c0_19] : memref<1x64xf32, #tpu.memory_space<vmem>>, vector<1x64xf32>
      %41 = vector.broadcast %40 : vector<1x64xf32> to vector<8x64xf32>
      %42 = arith.addf %39, %41 : vector<8x64xf32>
      %cst_20 = arith.constant 0.000000e+00 : f32
      %43 = vector.broadcast %cst_20 : f32 to vector<8x64xf32>
      %44 = arith.maximumf %42, %43 : vector<8x64xf32>
      %c0_21 = arith.constant 0 : index
      %c0_22 = arith.constant 0 : index
      %45 = vector.load %arg13[%c0_21, %c0_22] : memref<1x64xf32, #tpu.memory_space<vmem>>, vector<1x64xf32>
      %c0_23 = arith.constant 0 : index
      %c0_24 = arith.constant 0 : index
      %46 = vector.load %arg14[%c0_23, %c0_24] : memref<1x64xf32, #tpu.memory_space<vmem>>, vector<1x64xf32>
      %cst_25 = arith.constant dense<0.000000e+00> : vector<1x64xf32>
      %47 = tpu.matmul %17, %44, %cst_25 {dimension_numbers = #tpu.dot_dimension_numbers<[1], [0], [0], [1], [0, 0, 1, 1], [], []>, precision = #tpu.contract_precision<fp32>} : vector<1x8xf32>, vector<8x64xf32>, vector<1x64xf32> -> vector<1x64xf32>
      %cst_26 = arith.constant 1.250000e-01 : f32
      %48 = vector.broadcast %cst_26 : f32 to vector<1x64xf32>
      %49 = arith.mulf %47, %48 : vector<1x64xf32>
      %50 = vector.broadcast %49 : vector<1x64xf32> to vector<8x64xf32>
      %51 = arith.subf %44, %50 : vector<8x64xf32>
      %52 = arith.mulf %51, %51 : vector<8x64xf32>
      %cst_27 = arith.constant dense<0.000000e+00> : vector<1x64xf32>
      %53 = tpu.matmul %17, %52, %cst_27 {dimension_numbers = #tpu.dot_dimension_numbers<[1], [0], [0], [1], [0, 0, 1, 1], [], []>, precision = #tpu.contract_precision<fp32>} : vector<1x8xf32>, vector<8x64xf32>, vector<1x64xf32> -> vector<1x64xf32>
      %cst_28 = arith.constant 1.250000e-01 : f32
      %54 = vector.broadcast %cst_28 : f32 to vector<1x64xf32>
      %55 = arith.mulf %53, %54 : vector<1x64xf32>
      %cst_29 = arith.constant 9.99999974E-6 : f32
      %56 = vector.broadcast %cst_29 : f32 to vector<1x64xf32>
      %57 = arith.addf %55, %56 : vector<1x64xf32>
      %58 = math.rsqrt %57 : vector<1x64xf32>
      %59 = arith.mulf %58, %45 : vector<1x64xf32>
      %60 = vector.broadcast %59 : vector<1x64xf32> to vector<8x64xf32>
      %61 = arith.mulf %51, %60 : vector<8x64xf32>
      %62 = vector.broadcast %46 : vector<1x64xf32> to vector<8x64xf32>
      %63 = arith.addf %61, %62 : vector<8x64xf32>
      %c0_30 = arith.constant 0 : index
      %c0_31 = arith.constant 0 : index
      %64 = vector.load %arg7[%c0_30, %c0_31] : memref<64x32xf32, #tpu.memory_space<vmem>>, vector<64x32xf32>
      %cst_32 = arith.constant dense<0.000000e+00> : vector<8x32xf32>
      %65 = tpu.matmul %63, %64, %cst_32 {dimension_numbers = #tpu.dot_dimension_numbers<[1], [0], [0], [1], [0, 0, 1, 1], [], []>, precision = #tpu.contract_precision<fp32>} : vector<8x64xf32>, vector<64x32xf32>, vector<8x32xf32> -> vector<8x32xf32>
      %c0_33 = arith.constant 0 : index
      %c0_34 = arith.constant 0 : index
      %66 = vector.load %arg8[%c0_33, %c0_34] : memref<1x32xf32, #tpu.memory_space<vmem>>, vector<1x32xf32>
      %67 = vector.broadcast %66 : vector<1x32xf32> to vector<8x32xf32>
      %68 = arith.addf %65, %67 : vector<8x32xf32>
      %cst_35 = arith.constant 0.000000e+00 : f32
      %69 = vector.broadcast %cst_35 : f32 to vector<8x32xf32>
      %70 = arith.maximumf %68, %69 : vector<8x32xf32>
      %c0_36 = arith.constant 0 : index
      %c0_37 = arith.constant 0 : index
      %71 = vector.load %arg11[%c0_36, %c0_37] : memref<1x32xf32, #tpu.memory_space<vmem>>, vector<1x32xf32>
      %c0_38 = arith.constant 0 : index
      %c0_39 = arith.constant 0 : index
      %72 = vector.load %arg12[%c0_38, %c0_39] : memref<1x32xf32, #tpu.memory_space<vmem>>, vector<1x32xf32>
      %cst_40 = arith.constant dense<0.000000e+00> : vector<1x32xf32>
      %73 = tpu.matmul %17, %70, %cst_40 {dimension_numbers = #tpu.dot_dimension_numbers<[1], [0], [0], [1], [0, 0, 1, 1], [], []>, precision = #tpu.contract_precision<fp32>} : vector<1x8xf32>, vector<8x32xf32>, vector<1x32xf32> -> vector<1x32xf32>
      %cst_41 = arith.constant 1.250000e-01 : f32
      %74 = vector.broadcast %cst_41 : f32 to vector<1x32xf32>
      %75 = arith.mulf %73, %74 : vector<1x32xf32>
      %76 = vector.broadcast %75 : vector<1x32xf32> to vector<8x32xf32>
      %77 = arith.subf %70, %76 : vector<8x32xf32>
      %78 = arith.mulf %77, %77 : vector<8x32xf32>
      %cst_42 = arith.constant dense<0.000000e+00> : vector<1x32xf32>
      %79 = tpu.matmul %17, %78, %cst_42 {dimension_numbers = #tpu.dot_dimension_numbers<[1], [0], [0], [1], [0, 0, 1, 1], [], []>, precision = #tpu.contract_precision<fp32>} : vector<1x8xf32>, vector<8x32xf32>, vector<1x32xf32> -> vector<1x32xf32>
      %cst_43 = arith.constant 1.250000e-01 : f32
      %80 = vector.broadcast %cst_43 : f32 to vector<1x32xf32>
      %81 = arith.mulf %79, %80 : vector<1x32xf32>
      %cst_44 = arith.constant 9.99999974E-6 : f32
      %82 = vector.broadcast %cst_44 : f32 to vector<1x32xf32>
      %83 = arith.addf %81, %82 : vector<1x32xf32>
      %84 = math.rsqrt %83 : vector<1x32xf32>
      %85 = arith.mulf %84, %71 : vector<1x32xf32>
      %86 = vector.broadcast %85 : vector<1x32xf32> to vector<8x32xf32>
      %87 = arith.mulf %77, %86 : vector<8x32xf32>
      %88 = vector.broadcast %72 : vector<1x32xf32> to vector<8x32xf32>
      %89 = arith.addf %87, %88 : vector<8x32xf32>
      %c0_45 = arith.constant 0 : index
      %c0_46 = arith.constant 0 : index
      %90 = vector.load %arg16[%c0_45, %c0_46] : memref<8x32xf32, #tpu.memory_space<vmem>>, vector<8x32xf32>
      tpu.vector_store %arg16[%c0_45, %c0_46], %89 {strides = array<i32>} : memref<8x32xf32, #tpu.memory_space<vmem>>, vector<8x32xf32>,
    } else {
    }
    %c1_i32_3 = arith.constant 1 : i32
    %10 = arith.cmpi eq, %arg0, %c1_i32_3 : i32
    %11 = arith.extui %10 : i1 to i32
    %c0_i32_4 = arith.constant 0 : i32
    %12 = arith.cmpi ne, %11, %c0_i32_4 : i32
    scf.if %12 {
      %13 = arith.index_cast %1 : i32 to index
      %c0 = arith.constant 0 : index
      %14 = vector.load %arg16[%13, %c0] : memref<8x32xf32, #tpu.memory_space<vmem>>, vector<8x32xf32>
      %c0_5 = arith.constant 0 : index
      %c0_6 = arith.constant 0 : index
      %15 = vector.load %arg9[%c0_5, %c0_6] : memref<32x8xf32, #tpu.memory_space<vmem>>, vector<32x8xf32>
      %cst = arith.constant dense<0.000000e+00> : vector<8x8xf32>
      %16 = tpu.matmul %14, %15, %cst {dimension_numbers = #tpu.dot_dimension_numbers<[1], [0], [0], [1], [0, 0, 1, 1], [], []>, precision = #tpu.contract_precision<fp32>} : vector<8x32xf32>, vector<32x8xf32>, vector<8x8xf32> -> vector<8x8xf32>
      %c0_7 = arith.constant 0 : index
      %c0_8 = arith.constant 0 : index
      %17 = vector.load %arg10[%c0_7, %c0_8] : memref<1x8xf32, #tpu.memory_space<vmem>>, vector<1x8xf32>
      %18 = vector.broadcast %17 : vector<1x8xf32> to vector<8x8xf32>
      %19 = arith.addf %16, %18 : vector<8x8xf32>
      %c0_9 = arith.constant 0 : index
      %c0_10 = arith.constant 0 : index
      %20 = vector.load %arg15[%c0_9, %c0_10] : memref<8x8xf32, #tpu.memory_space<vmem>>, vector<8x8xf32>
      tpu.vector_store %arg15[%c0_9, %c0_10], %19 {strides = array<i32>} : memref<8x8xf32, #tpu.memory_space<vmem>>, vector<8x8xf32>,
    } else {
    }
    return
  }
  func.func @transform_0(%arg0: i32, %arg1: i32) -> (i32, i32) {
    %c0_i32 = arith.constant 0 : i32
    %0 = arith.cmpi eq, %arg0, %c0_i32 : i32
    %c0_i32_0 = arith.constant 0 : i32
    %1 = arith.select %0, %arg1, %c0_i32_0 : i32
    %c0_i32_1 = arith.constant 0 : i32
    %c0_i32_2 = arith.constant 0 : i32
    return %1, %c0_i32_1 : i32, i32
  }
  func.func @transform_1(%arg0: i32, %arg1: i32) -> (i32, i32) {
    %c0_i32 = arith.constant 0 : i32
    %c0_i32_0 = arith.constant 0 : i32
    %c0_i32_1 = arith.constant 0 : i32
    return %c0_i32, %c0_i32_0 : i32, i32
  }
  func.func @transform_2(%arg0: i32, %arg1: i32) -> (i32, i32) {
    %c0_i32 = arith.constant 0 : i32
    %c0_i32_0 = arith.constant 0 : i32
    %c0_i32_1 = arith.constant 0 : i32
    return %c0_i32, %c0_i32_0 : i32, i32
  }
  func.func @transform_3(%arg0: i32, %arg1: i32) -> (i32, i32) {
    %c0_i32 = arith.constant 0 : i32
    %c0_i32_0 = arith.constant 0 : i32
    %c0_i32_1 = arith.constant 0 : i32
    return %c0_i32, %c0_i32_0 : i32, i32
  }
  func.func @transform_4(%arg0: i32, %arg1: i32) -> (i32, i32) {
    %c0_i32 = arith.constant 0 : i32
    %c0_i32_0 = arith.constant 0 : i32
    %c0_i32_1 = arith.constant 0 : i32
    return %c0_i32, %c0_i32_0 : i32, i32
  }
  func.func @transform_5(%arg0: i32, %arg1: i32) -> (i32, i32) {
    %c0_i32 = arith.constant 0 : i32
    %c0_i32_0 = arith.constant 0 : i32
    %c0_i32_1 = arith.constant 0 : i32
    return %c0_i32, %c0_i32_0 : i32, i32
  }
  func.func @transform_6(%arg0: i32, %arg1: i32) -> (i32, i32) {
    %c0_i32 = arith.constant 0 : i32
    %c0_i32_0 = arith.constant 0 : i32
    %c0_i32_1 = arith.constant 0 : i32
    return %c0_i32, %c0_i32_0 : i32, i32
  }
  func.func @transform_7(%arg0: i32, %arg1: i32) -> (i32, i32) {
    %c0_i32 = arith.constant 0 : i32
    %c0_i32_0 = arith.constant 0 : i32
    %c0_i32_1 = arith.constant 0 : i32
    return %c0_i32, %c0_i32_0 : i32, i32
  }
  func.func @transform_8(%arg0: i32, %arg1: i32) -> (i32, i32) {
    %c0_i32 = arith.constant 0 : i32
    %c0_i32_0 = arith.constant 0 : i32
    %c0_i32_1 = arith.constant 0 : i32
    return %c0_i32, %c0_i32_0 : i32, i32
  }
  func.func @transform_9(%arg0: i32, %arg1: i32) -> (i32, i32) {
    %c0_i32 = arith.constant 0 : i32
    %c0_i32_0 = arith.constant 0 : i32
    %c0_i32_1 = arith.constant 0 : i32
    return %c0_i32, %c0_i32_0 : i32, i32
  }
  func.func @transform_10(%arg0: i32, %arg1: i32) -> (i32, i32) {
    %c0_i32 = arith.constant 0 : i32
    %c0_i32_0 = arith.constant 0 : i32
    %c0_i32_1 = arith.constant 0 : i32
    return %c0_i32, %c0_i32_0 : i32, i32
  }
  func.func @transform_11(%arg0: i32, %arg1: i32) -> (i32, i32) {
    %c0_i32 = arith.constant 0 : i32
    %c0_i32_0 = arith.constant 0 : i32
    %c0_i32_1 = arith.constant 0 : i32
    return %c0_i32, %c0_i32_0 : i32, i32
  }
  func.func @transform_12(%arg0: i32, %arg1: i32) -> (i32, i32) {
    %c0_i32 = arith.constant 0 : i32
    %c0_i32_0 = arith.constant 0 : i32
    %c0_i32_1 = arith.constant 0 : i32
    return %c0_i32, %c0_i32_0 : i32, i32
  }
  func.func @transform_13(%arg0: i32, %arg1: i32) -> (i32, i32) {
    %c0_i32 = arith.constant 0 : i32
    %0 = arith.cmpi eq, %arg0, %c0_i32 : i32
    %c0_i32_0 = arith.constant 0 : i32
    %1 = arith.select %0, %c0_i32_0, %arg1 : i32
    %c0_i32_1 = arith.constant 0 : i32
    %c0_i32_2 = arith.constant 0 : i32
    return %1, %c0_i32_1 : i32, i32
  }
}

</mosaic_0001>

<bundles_post_ra>
// kernel: tpu_custom_call.1
= control target key start
LH: loop header
LB: loop body
LE: loop exit
PB: predicated region body
PF: predicated region fallthrough
CT: control target
= control target key end

     0   :  { %s8119_s0 = inlined_call_operand.hbm [shape: f32[8,16], index: 0, kind: input, shape index: {}]   ;;  %s8120_s1 = inlined_call_operand.hbm [shape: f32[16,32], index: 1, kind: input, shape index: {}]   ;;  %s8121_s2 = inlined_call_operand.hbm [shape: f32[1,32], index: 2, kind: input, shape index: {}]   ;;  %s8122_s3 = inlined_call_operand.hbm [shape: f32[32,64], index: 3, kind: input, shape index: {}]   ;;  %s8123_s4 = inlined_call_operand.hbm [shape: f32[1,64], index: 4, kind: input, shape index: {}]   ;;  %s8124_s5 = inlined_call_operand.hbm [shape: f32[64,32], index: 5, kind: input, shape index: {}]   ;;  %s8125_s6 = inlined_call_operand.hbm [shape: f32[1,32], index: 6, kind: input, shape index: {}]   ;;  %s8126_s7 = inlined_call_operand.hbm [shape: f32[32,8], index: 7, kind: input, shape index: {}]   ;;  %s8127_s8 = inlined_call_operand.hbm [shape: f32[1,8], index: 8, kind: input, shape index: {}]   ;;  %s8128_s9 = inlined_call_operand.hbm [shape: f32[1,32], index: 9, kind: input, shape index: {}]   ;;  %s8129_s10 = inlined_call_operand.hbm [shape: f32[1,32], index: 10, kind: input, shape index: {}]   ;;  %s8130_s11 = inlined_call_operand.hbm [shape: f32[1,64], index: 11, kind: input, shape index: {}]   ;;  %s8131_s12 = inlined_call_operand.hbm [shape: f32[1,64], index: 12, kind: input, shape index: {}]   ;;  %s8132_s13 = inlined_call_operand.hbm [shape: f32[8,8], index: 13, kind: output, shape index: {}]  }
   0x1   :  { %8142 = sst [smem:[#allocation38_spill]] %s8132_s13 }
   0x2   :  { %18 = vsyncpa [#allocation4], 0 }
   0x3   :  { %20 = vsyncpa [#allocation4 + $0x1], 0 }
   0x4   :  { %21 = vsyncpa [#allocation7], 0 }
   0x5   :  { %22 = vsyncpa [#allocation10], 0 }
   0x6   :  { %23 = vsyncpa [#allocation13], 0 }
   0x7   :  { %24 = vsyncpa [#allocation16], 0 }
   0x8   :  { %25 = vsyncpa [#allocation19], 0 }
   0x9   :  { %26 = vsyncpa [#allocation22], 0 }
   0xa   :  { %27 = vsyncpa [#allocation5], 0 }
   0xb   :  { %29 = vsyncpa [#allocation5 + $0x1], 0  ;;  %s7392_s25 = smov 0   ;;  %s7394_s26 = smov 0  }
   0xc   :  { %s7396_s27 = smov 0  }
   0xd LB: > { %8143 = sst [smem:[#allocation33_spill]] %s7287_s25  ;;  %s8133_s28 = sadd.s32 4294967295, %s7295_s27   ;;  %s7295_s27 = sphi %s7396_s27, %s35_s27   ;;  %s7291_s26 = sphi %s7394_s26, %s8168_s26   ;;  %s7287_s25 = sphi %s7392_s25, %s8167_s25  }
   0xe   : > { %8144 = sst [smem:[#allocation34_spill]] %s7291_s26  ;;  %s47_s30 = sadd.s32 1, %s7291_s26 }
   0xf   : > { %p5669_p0 = scmp.ge.s32.totalorder %s7295_s27, 1  ;;  %p49_p1 = scmp.ge.s32.totalorder %s47_s30, 2 }
  0x10   : > { %p364_p2 = scmp.lt.s32.totalorder %s7295_s27, 3  ;;  %p7414_p3 = scmp.eq.s32.totalorder %s8133_s28, 0 }
  0x11   : > { %s8170_s30 = smov (%p49_p1, %s47_s30), 0  ;;  %s7297_s16 = smov [#allocation6]  }
  0x12   : > { %s8145_s14 = scalar_select %p7414_p3, 1, 0 }
  0x13   : > { %8147 = sst [smem:[#allocation36_spill]] %s8170_s30  ;;  %p7420_p4 = pnand %p5669_p0, %p364_p2 }
  0x14   : > { %8146 = sst [smem:[#allocation35_spill]] %s8145_s14  ;;  %s376_s17 = sshll.u32 %s7297_s16, 4  ;;  %s377_s17 = int_to_ptr.vmem [resolvable:$true] %s376_s17 }
  0x15   : > { %s8148_s15 = scalar_select %p7420_p4, 1, 0 }
  0x16   : > { %p6721_p5 = pneg %p7420_p4  ;;  %s7298_s19 = smov [#allocation9]  }
  0x17   : > { %8149 = sst [smem:[#allocation37_spill]] %s8148_s15  ;;  %s400_s20 = sshll.u32 %s7298_s19, 4  ;;  %s401_s20 = int_to_ptr.vmem [resolvable:$true] %s400_s20 }
  0x18   : > { %p7429_p7 = pnand %p7414_p3, %p6721_p5  ;;  %s6851_s23 = scalar_lea.hbm %s8120_s1, 256 }
  0x19   : > { %p6852_p8 = scmp.ne.s32.totalorder %s8120_s1, %s6851_s23  ;;  %p6858_p12 = scmp.lt.u32.totalorder %s6851_s23, %s8120_s1 }
  0x1a   : > { %p7441_p9 = pneg %p7429_p7 }
  0x1c   : > { %p6854_p10 = pnand %p7441_p9, %p6852_p8 }
  0x1e   : > { %p6855_p11 = pneg %p6854_p10 }
  0x20   : > { %p6860_p13 = pnand %p6858_p12, %p6855_p11 }
  0x22   : > { %6863 = shalt.err (!%p6860_p13)
}
  0x23   : > { %s6864_s19 = scalar_lea.vmem %s377_s17, 256  ;;  %p6872_p5 = scmp.lt.s32.totalorder %s377_s17, %s377_s17 }
  0x24   : > { %p6865_p0 = scmp.ne.s32.totalorder %s377_s17, %s6864_s19  ;;  %p6873_p6 = scmp.lt.s32.totalorder %s6864_s19, %s6864_s19 }
  0x26   : > { %p6867_p1 = pnand %p6865_p0, %p7441_p9  ;;  %p6874_p3 = por %p6873_p6, %p6872_p5 }
  0x28   : > { %p6868_p2 = pneg %p6867_p1 }
  0x2a   : > { %p6875_p4 = pnand %p6874_p3, %p6868_p2 }
  0x2c   : > { %6878 = shalt.err (!%p6875_p4)
}
  0x2d   : > { %s7299_s29 = smov 128   ;;  %s7300_s21 = smov 8  }
  0x2e   : > { %6724 = dma.hbm_to_vmem [thread:$0]  (!%p7429_p7), %s8120_s1, 256, %s377_s17, [#allocation7], %s7299_s29, %s7299_s29, %s7300_s21  }
  0x2f   : > { %s7301_s22 = smov [#allocation12]   ;;  %s6879_s26 = scalar_lea.hbm %s8122_s3, 512 }
  0x30   : > { %s424_s23 = sshll.u32 %s7301_s22, 4  ;;  %p6880_p3 = scmp.ne.s32.totalorder %s8122_s3, %s6879_s26  ;;  %s425_s23 = int_to_ptr.vmem [resolvable:$true] %s424_s23 }
  0x31   : > { %p6886_p8 = scmp.lt.u32.totalorder %s6879_s26, %s8122_s3 }
  0x32   : > { %p6882_p4 = pnand %p6880_p3, %p7441_p9 }
  0x34   : > { %p6883_p6 = pneg %p6882_p4 }
  0x36   : > { %p6888_p10 = pnand %p6886_p8, %p6883_p6 }
  0x38   : > { %6891 = shalt.err (!%p6888_p10)
}
  0x39   : > { %s6892_s17 = scalar_lea.vmem %s401_s20, 512  ;;  %p6900_p0 = scmp.lt.s32.totalorder %s401_s20, %s401_s20 }
  0x3a   : > { %p6893_p11 = scmp.ne.s32.totalorder %s401_s20, %s6892_s17  ;;  %p6901_p1 = scmp.lt.s32.totalorder %s6892_s17, %s6892_s17 }
  0x3c   : > { %p6895_p12 = pnand %p6893_p11, %p7441_p9  ;;  %p6902_p2 = por %p6901_p1, %p6900_p0 }
  0x3e   : > { %p6896_p13 = pneg %p6895_p12 }
  0x40   : > { %p6903_p5 = pnand %p6902_p2, %p6896_p13 }
  0x42   : > { %6906 = shalt.err (!%p6903_p5)
}
  0x43   : > { %6730 = dma.hbm_to_vmem [thread:$0]  (!%p7429_p7), %s8122_s3, 512, %s401_s20, [#allocation10], %s7299_s29, %s7299_s29, %s7300_s21  }
  0x44   : > { %s6907_s15 = scalar_lea.hbm %s8124_s5, 1024 }
  0x45   : > { %p6908_p3 = scmp.ne.s32.totalorder %s8124_s5, %s6907_s15  ;;  %p6914_p8 = scmp.lt.u32.totalorder %s6907_s15, %s8124_s5 }
  0x47   : > { %p6910_p4 = pnand %p6908_p3, %p7441_p9 }
  0x49   : > { %p6911_p6 = pneg %p6910_p4 }
  0x4b   : > { %p6916_p10 = pnand %p6914_p8, %p6911_p6 }
  0x4d   : > { %6919 = shalt.err (!%p6916_p10)
}
  0x4e   : > { %s6920_s19 = scalar_lea.vmem %s425_s23, 1024  ;;  %p6928_p0 = scmp.lt.s32.totalorder %s425_s23, %s425_s23 }
  0x4f   : > { %p6921_p11 = scmp.ne.s32.totalorder %s425_s23, %s6920_s19  ;;  %p6929_p1 = scmp.lt.s32.totalorder %s6920_s19, %s6920_s19 }
  0x51   : > { %p6923_p12 = pnand %p6921_p11, %p7441_p9  ;;  %p6930_p2 = por %p6929_p1, %p6928_p0 }
  0x53   : > { %p6924_p13 = pneg %p6923_p12 }
  0x55   : > { %p6931_p5 = pnand %p6930_p2, %p6924_p13 }
  0x57   : > { %6934 = shalt.err (!%p6931_p5)
}
  0x58   : > { %6736 = dma.hbm_to_vmem [thread:$0]  (!%p7429_p7), %s8124_s5, 1024, %s425_s23, [#allocation13], %s7299_s29, %s7299_s29, %s7300_s21  }
  0x59   : > { %s7302_s13 = smov [#allocation15]   ;;  %s7303_s26 = smov [#allocation18]  }
  0x5a   : > { %s448_s25 = sshll.u32 %s7302_s13, 4  ;;  %s473_s14 = sshll.u32 %s7303_s26, 4  ;;  %s449_s25 = int_to_ptr.vmem [resolvable:$true] %s448_s25  ;;  %s474_s14 = int_to_ptr.vmem [resolvable:$true] %s473_s14 }
  0x5b   : > { %s6935_s30 = scalar_lea.hbm %s8126_s7, 512 }
  0x5c   : > { %p6936_p3 = scmp.ne.s32.totalorder %s8126_s7, %s6935_s30  ;;  %p6942_p8 = scmp.lt.u32.totalorder %s6935_s30, %s8126_s7 }
  0x5e   : > { %p6938_p4 = pnand %p6936_p3, %p7441_p9 }
  0x60   : > { %p6939_p6 = pneg %p6938_p4 }
  0x62   : > { %p6944_p10 = pnand %p6942_p8, %p6939_p6 }
  0x64   : > { %6947 = shalt.err (!%p6944_p10)
}
  0x65   : > { %s6948_s23 = scalar_lea.vmem %s449_s25, 512  ;;  %p6956_p0 = scmp.lt.s32.totalorder %s449_s25, %s449_s25 }
  0x66   : > { %p6949_p11 = scmp.ne.s32.totalorder %s449_s25, %s6948_s23  ;;  %p6957_p1 = scmp.lt.s32.totalorder %s6948_s23, %s6948_s23 }
  0x68   : > { %p6951_p12 = pnand %p6949_p11, %p7441_p9  ;;  %p6958_p2 = por %p6957_p1, %p6956_p0 }
  0x6a   : > { %p6952_p13 = pneg %p6951_p12 }
  0x6c   : > { %p6959_p5 = pnand %p6958_p2, %p6952_p13 }
  0x6e   : > { %6962 = shalt.err (!%p6959_p5)
}
  0x6f   : > { %6742 = dma.hbm_to_vmem [thread:$0]  (!%p7429_p7), %s8126_s7, 512, %s449_s25, [#allocation16], %s7299_s29, %s7299_s29, %s7300_s21  }
  0x70   : > { %s6963_s28 = scalar_lea.hbm %s8128_s9, 16 }
  0x71   : > { %p6964_p3 = scmp.ne.s32.totalorder %s8128_s9, %s6963_s28  ;;  %p6970_p8 = scmp.lt.u32.totalorder %s6963_s28, %s8128_s9 }
  0x73   : > { %p6966_p4 = pnand %p6964_p3, %p7441_p9 }
  0x75   : > { %p6967_p6 = pneg %p6966_p4 }
  0x77   : > { %p6972_p10 = pnand %p6970_p8, %p6967_p6 }
  0x79   : > { %6975 = shalt.err (!%p6972_p10)
}
  0x7a   : > { %s6976_s20 = scalar_lea.vmem %s474_s14, 16  ;;  %s6983_s29 = scalar_lea.vmem %s474_s14, 32 }
  0x7b   : > { %p6977_p11 = scmp.ne.s32.totalorder %s474_s14, %s6976_s20  ;;  %p6984_p0 = scmp.lt.s32.totalorder %s474_s14, %s474_s14 }
  0x7c   : > { %p6985_p1 = scmp.lt.s32.totalorder %s6983_s29, %s6976_s20 }
  0x7d   : > { %p6979_p12 = pnand %p6977_p11, %p7441_p9 }
  0x7e   : > { %p6986_p2 = por %p6985_p1, %p6984_p0 }
  0x7f   : > { %p6980_p13 = pneg %p6979_p12 }
  0x81   : > { %p6987_p5 = pnand %p6986_p2, %p6980_p13 }
  0x83   : > { %6990 = shalt.err (!%p6987_p5)
}
  0x84   : > { %6748 = dma.hbm_to_vmem [thread:$0]  (!%p7429_p7), %s8128_s9, 16, %s474_s14, [#allocation19]  }
  0x85   : > { %s7304_s23 = smov [#allocation21]   ;;  %s7305_s13 = smov [#allocation8]  }
  0x86   : > { %s495_s17 = sshll.u32 %s7304_s23, 4  ;;  %s390_s26 = sshll.u32 %s7305_s13, 4  ;;  %s496_s17 = int_to_ptr.vmem [resolvable:$true] %s495_s17  ;;  %s391_s26 = int_to_ptr.vmem [resolvable:$true] %s390_s26 }
  0x87   : > { %s6991_s30 = scalar_lea.hbm %s8130_s11, 16 }
  0x88   : > { %p6992_p3 = scmp.ne.s32.totalorder %s8130_s11, %s6991_s30  ;;  %p6998_p8 = scmp.lt.u32.totalorder %s6991_s30, %s8130_s11 }
  0x8a   : > { %p6994_p4 = pnand %p6992_p3, %p7441_p9 }
  0x8c   : > { %p6995_p6 = pneg %p6994_p4 }
  0x8e   : > { %p7000_p10 = pnand %p6998_p8, %p6995_p6 }
  0x90   : > { %7003 = shalt.err (!%p7000_p10)
}
  0x91   : > { %s7004_s14 = scalar_lea.vmem %s496_s17, 16  ;;  %s7011_s29 = scalar_lea.vmem %s496_s17, 32 }
  0x92   : > { %p7005_p11 = scmp.ne.s32.totalorder %s496_s17, %s7004_s14  ;;  %p7012_p0 = scmp.lt.s32.totalorder %s496_s17, %s496_s17 }
  0x93   : > { %p7013_p1 = scmp.lt.s32.totalorder %s7011_s29, %s7004_s14 }
  0x94   : > { %p7007_p12 = pnand %p7005_p11, %p7441_p9 }
  0x95   : > { %p7014_p2 = por %p7013_p1, %p7012_p0 }
  0x96   : > { %p7008_p13 = pneg %p7007_p12 }
  0x98   : > { %p7015_p5 = pnand %p7014_p2, %p7008_p13 }
  0x9a   : > { %7018 = shalt.err (!%p7015_p5)
}
  0x9b   : > { %6754 = dma.hbm_to_vmem [thread:$0]  (!%p7429_p7), %s8130_s11, 16, %s496_s17, [#allocation22]  }
  0x9c   : > { %s7019_s15 = scalar_lea.hbm %s8121_s2, 16 }
  0x9d   : > { %p7020_p3 = scmp.ne.s32.totalorder %s8121_s2, %s7019_s15  ;;  %p7026_p8 = scmp.lt.u32.totalorder %s7019_s15, %s8121_s2 }
  0x9f   : > { %p7022_p4 = pnand %p7020_p3, %p7441_p9 }
  0xa1   : > { %p7023_p6 = pneg %p7022_p4 }
  0xa3   : > { %p7028_p10 = pnand %p7026_p8, %p7023_p6 }
  0xa5   : > { %7031 = shalt.err (!%p7028_p10)
}
  0xa6   : > { %s7032_s19 = scalar_lea.vmem %s391_s26, 16  ;;  %s7039_s17 = scalar_lea.vmem %s391_s26, 32 }
  0xa7   : > { %p7033_p11 = scmp.ne.s32.totalorder %s391_s26, %s7032_s19  ;;  %p7040_p0 = scmp.lt.s32.totalorder %s391_s26, %s391_s26 }
  0xa8   : > { %p7041_p1 = scmp.lt.s32.totalorder %s7039_s17, %s7032_s19 }
  0xa9   : > { %p7035_p12 = pnand %p7033_p11, %p7441_p9 }
  0xaa   : > { %p7042_p2 = por %p7041_p1, %p7040_p0 }
  0xab   : > { %p7036_p13 = pneg %p7035_p12 }
  0xad   : > { %p7043_p5 = pnand %p7042_p2, %p7036_p13 }
  0xaf   : > { %7046 = shalt.err (!%p7043_p5)
}
  0xb0   : > { %6727 = dma.hbm_to_vmem [thread:$0]  (!%p7429_p7), %s8121_s2, 16, %s391_s26, [#allocation7]  }
  0xb1   : > { %s7306_s29 = smov [#allocation11]   ;;  %s7307_s25 = smov [#allocation14]  }
  0xb2   : > { %s414_s21 = sshll.u32 %s7306_s29, 4  ;;  %s438_s23 = sshll.u32 %s7307_s25, 4  ;;  %s415_s21 = int_to_ptr.vmem [resolvable:$true] %s414_s21  ;;  %s439_s23 = int_to_ptr.vmem [resolvable:$true] %s438_s23 }
  0xb3   : > { %s7047_s28 = scalar_lea.hbm %s8123_s4, 16 }
  0xb4   : > { %p7048_p3 = scmp.ne.s32.totalorder %s8123_s4, %s7047_s28  ;;  %p7054_p8 = scmp.lt.u32.totalorder %s7047_s28, %s8123_s4 }
  0xb6   : > { %p7050_p4 = pnand %p7048_p3, %p7441_p9 }
  0xb8   : > { %p7051_p6 = pneg %p7050_p4 }
  0xba   : > { %p7056_p10 = pnand %p7054_p8, %p7051_p6 }
  0xbc   : > { %7059 = shalt.err (!%p7056_p10)
}
  0xbd   : > { %s7060_s26 = scalar_lea.vmem %s415_s21, 16  ;;  %s7067_s17 = scalar_lea.vmem %s415_s21, 32 }
  0xbe   : > { %p7061_p11 = scmp.ne.s32.totalorder %s415_s21, %s7060_s26  ;;  %p7068_p0 = scmp.lt.s32.totalorder %s415_s21, %s415_s21 }
  0xbf   : > { %p7069_p1 = scmp.lt.s32.totalorder %s7067_s17, %s7060_s26 }
  0xc0   : > { %p7063_p12 = pnand %p7061_p11, %p7441_p9 }
  0xc1   : > { %p7070_p2 = por %p7069_p1, %p7068_p0 }
  0xc2   : > { %p7064_p13 = pneg %p7063_p12 }
  0xc4   : > { %p7071_p5 = pnand %p7070_p2, %p7064_p13 }
  0xc6   : > { %7074 = shalt.err (!%p7071_p5)
}
  0xc7   : > { %6733 = dma.hbm_to_vmem [thread:$0]  (!%p7429_p7), %s8123_s4, 16, %s415_s21, [#allocation10]  }
  0xc8   : > { %s7075_s13 = scalar_lea.hbm %s8125_s6, 16 }
  0xc9   : > { %p7076_p3 = scmp.ne.s32.totalorder %s8125_s6, %s7075_s13  ;;  %p7082_p8 = scmp.lt.u32.totalorder %s7075_s13, %s8125_s6 }
  0xcb   : > { %p7078_p4 = pnand %p7076_p3, %p7441_p9 }
  0xcd   : > { %p7079_p6 = pneg %p7078_p4 }
  0xcf   : > { %p7084_p10 = pnand %p7082_p8, %p7079_p6 }
  0xd1   : > { %7087 = shalt.err (!%p7084_p10)
}
  0xd2   : > { %s7088_s24 = scalar_lea.vmem %s439_s23, 16  ;;  %s7095_s21 = scalar_lea.vmem %s439_s23, 32 }
  0xd3   : > { %p7089_p11 = scmp.ne.s32.totalorder %s439_s23, %s7088_s24  ;;  %p7096_p0 = scmp.lt.s32.totalorder %s439_s23, %s439_s23 }
  0xd4   : > { %p7097_p1 = scmp.lt.s32.totalorder %s7095_s21, %s7088_s24 }
  0xd5   : > { %p7091_p12 = pnand %p7089_p11, %p7441_p9 }
  0xd6   : > { %p7098_p2 = por %p7097_p1, %p7096_p0 }
  0xd7   : > { %p7092_p13 = pneg %p7091_p12 }
  0xd9   : > { %p7099_p5 = pnand %p7098_p2, %p7092_p13 }
  0xdb   : > { %7102 = shalt.err (!%p7099_p5)
}
  0xdc   : > { %6739 = dma.hbm_to_vmem [thread:$0]  (!%p7429_p7), %s8125_s6, 16, %s439_s23, [#allocation13]  }
  0xdd   : > { %s7308_s17 = smov [#allocation17]   ;;  %s7309_s14 = smov [#allocation20]  }
  0xde   : > { %s462_s20 = sshll.u32 %s7308_s17, 4  ;;  %s484_s29 = sshll.u32 %s7309_s14, 4  ;;  %s463_s20 = int_to_ptr.vmem [resolvable:$true] %s462_s20  ;;  %s485_s29 = int_to_ptr.vmem [resolvable:$true] %s484_s29 }
  0xdf   : > { %s7103_s15 = scalar_lea.hbm %s8127_s8, 16 }
  0xe0   : > { %p7104_p3 = scmp.ne.s32.totalorder %s8127_s8, %s7103_s15  ;;  %p7110_p8 = scmp.lt.u32.totalorder %s7103_s15, %s8127_s8 }
  0xe2   : > { %p7106_p4 = pnand %p7104_p3, %p7441_p9 }
  0xe4   : > { %p7107_p6 = pneg %p7106_p4 }
  0xe6   : > { %p7112_p10 = pnand %p7110_p8, %p7107_p6 }
  0xe8   : > { %7115 = shalt.err (!%p7112_p10)
}
  0xe9   : > { %s7116_s23 = scalar_lea.vmem %s463_s20, 16  ;;  %s7123_s21 = scalar_lea.vmem %s463_s20, 32 }
  0xea   : > { %p7117_p11 = scmp.ne.s32.totalorder %s463_s20, %s7116_s23  ;;  %p7124_p0 = scmp.lt.s32.totalorder %s463_s20, %s463_s20 }
  0xeb   : > { %p7125_p1 = scmp.lt.s32.totalorder %s7123_s21, %s7116_s23 }
  0xec   : > { %p7119_p12 = pnand %p7117_p11, %p7441_p9 }
  0xed   : > { %p7126_p2 = por %p7125_p1, %p7124_p0 }
  0xee   : > { %p7120_p13 = pneg %p7119_p12 }
  0xf0   : > { %p7127_p5 = pnand %p7126_p2, %p7120_p13 }
  0xf2   : > { %7130 = shalt.err (!%p7127_p5)
}
  0xf3   : > { %6745 = dma.hbm_to_vmem [thread:$0]  (!%p7429_p7), %s8127_s8, 16, %s463_s20, [#allocation16]  }
  0xf4   : > { %s7131_s25 = scalar_lea.hbm %s8129_s10, 16 }
  0xf5   : > { %p7132_p3 = scmp.ne.s32.totalorder %s8129_s10, %s7131_s25  ;;  %p7138_p8 = scmp.lt.u32.totalorder %s7131_s25, %s8129_s10 }
  0xf7   : > { %p7134_p4 = pnand %p7132_p3, %p7441_p9 }
  0xf9   : > { %p7135_p6 = pneg %p7134_p4 }
  0xfb   : > { %p7140_p10 = pnand %p7138_p8, %p7135_p6 }
  0xfd   : > { %7143 = shalt.err (!%p7140_p10)
}
  0xfe   : > { %s7144_s22 = scalar_lea.vmem %s485_s29, 16  ;;  %s7151_s20 = scalar_lea.vmem %s485_s29, 32 }
  0xff   : > { %p7145_p11 = scmp.ne.s32.totalorder %s485_s29, %s7144_s22  ;;  %p7152_p0 = scmp.lt.s32.totalorder %s485_s29, %s485_s29 }
 0x100   : > { %p7153_p1 = scmp.lt.s32.totalorder %s7151_s20, %s7144_s22 }
 0x101   : > { %p7147_p12 = pnand %p7145_p11, %p7441_p9 }
 0x102   : > { %p7154_p2 = por %p7153_p1, %p7152_p0 }
 0x103   : > { %p7148_p13 = pneg %p7147_p12 }
 0x105   : > { %p7155_p5 = pnand %p7154_p2, %p7148_p13 }
 0x107   : > { %7158 = shalt.err (!%p7155_p5)
}
 0x108   : > { %6751 = dma.hbm_to_vmem [thread:$0]  (!%p7429_p7), %s8129_s10, 16, %s485_s29, [#allocation19]  }
 0x109   : > { %s7310_s21 = smov [#allocation23]   ;;  %s7159_s14 = scalar_lea.hbm %s8131_s12, 16 }
 0x10a   : > { %s506_s19 = sshll.u32 %s7310_s21, 4  ;;  %p7160_p6 = scmp.ne.s32.totalorder %s8131_s12, %s7159_s14  ;;  %s507_s19 = int_to_ptr.vmem [resolvable:$true] %s506_s19 }
 0x10b   : > { %p7166_p11 = scmp.lt.u32.totalorder %s7159_s14, %s8131_s12 }
 0x10c   : > { %p7162_p8 = pnand %p7160_p6, %p7441_p9 }
 0x10e   : > { %p7163_p10 = pneg %p7162_p8 }
 0x110   : > { %p7168_p12 = pnand %p7166_p11, %p7163_p10 }
 0x112   : > { %7171 = shalt.err (!%p7168_p12)
}
 0x113   : > { %s7172_s29 = scalar_lea.vmem %s507_s19, 16  ;;  %s7179_s30 = scalar_lea.vmem %s507_s19, 32 }
 0x114   : > { %p7173_p13 = scmp.ne.s32.totalorder %s507_s19, %s7172_s29  ;;  %p7180_p2 = scmp.lt.s32.totalorder %s507_s19, %s507_s19 }
 0x115   : > { %p7181_p5 = scmp.lt.s32.totalorder %s7179_s30, %s7172_s29 }
 0x116   : > { %p7175_p0 = pnand %p7173_p13, %p7441_p9 }
 0x117   : > { %p7182_p4 = por %p7181_p5, %p7180_p2 }
 0x118   : > { %p7176_p1 = pneg %p7175_p0 }
 0x11a   : > { %p7183_p3 = pnand %p7182_p4, %p7176_p1 }
 0x11c   : > { %7186 = shalt.err (!%p7183_p3)
}
 0x11d   : > { %6757 = dma.hbm_to_vmem [thread:$0]  (!%p7429_p7), %s8131_s12, 16, %s507_s19, [#allocation22]  }
 0x11e   : > { %p8152_p6 = scmp.lt.s32.totalorder %s7295_s27, 2  ;;  %p8153_p8 = scmp.eq.s32.totalorder %s7295_s27, 0 }
 0x11f   : > { %s7311_s24 = smov [#allocation3]   ;;  %s7187_s18 = scalar_lea.hbm %s8119_s0, 128 }
 0x120   : > { %p7673_p10 = pnand %p8153_p8, %p8152_p6  ;;  %s530_s23 = sshll.u32 %s7311_s24, 4  ;;  %s531_s23 = int_to_ptr.vmem [resolvable:$true] %s530_s23 }
 0x121   : > { %p7188_p9 = scmp.ne.s32.totalorder %s8119_s0, %s7187_s18  ;;  %p7194_p11 = scmp.lt.u32.totalorder %s7187_s18, %s8119_s0 }
 0x122   : > { %p7189_p7 = pneg %p7673_p10 }
 0x124   : > { %p7190_p3 = pnand %p7189_p7, %p7188_p9 }
 0x126   : > { %p7191_p4 = pneg %p7190_p3 }
 0x128   : > { %p7196_p12 = pnand %p7194_p11, %p7191_p4 }
 0x12a   : > { %7199 = shalt.err (!%p7196_p12)
}
 0x12b   : > { %s7200_s13 = scalar_lea.vmem %s531_s23, 128  ;;  %s7207_s15 = scalar_lea.vmem %s531_s23, 256 }
 0x12c   : > { %p7201_p13 = scmp.ne.s32.totalorder %s531_s23, %s7200_s13  ;;  %p7208_p2 = scmp.lt.s32.totalorder %s531_s23, %s531_s23 }
 0x12d   : > { %p7209_p5 = scmp.lt.s32.totalorder %s7207_s15, %s7200_s13 }
 0x12e   : > { %p7203_p0 = pnand %p7201_p13, %p7189_p7 }
 0x12f   : > { %p7210_p6 = por %p7209_p5, %p7208_p2 }
 0x130   : > { %p7204_p1 = pneg %p7203_p0 }
 0x132   : > { %p7211_p8 = pnand %p7210_p6, %p7204_p1 }
 0x134   : > { %7214 = shalt.err (!%p7211_p8)
}
 0x135   : > { %6761 = dma.hbm_to_vmem [thread:$0]  (!%p7673_p10), %s8119_s0, 128, %s531_s23, [#allocation4]  }
 0x136   : > { %s8155_s30 = sld [smem:[#allocation37_spill]] }
 0x13c   : > { %p8156_p9 = scmp.ne.s32.totalorder %s8155_s30, 0 }
 0x13d   : > { %s8157_s22 = sld [smem:[#allocation35_spill]] (!%p8156_p9) }
 0x13e   : > { %539 = sbr.rel (%p8156_p9) target bundleno = 3053 (0xbed), region = 72 }
 0x143   : > { %p8158_p3 = scmp.ne.s32.totalorder (!%p8156_p9), %s8157_s22, 0 }
 0x145   : > { %7254 = dma.done.wait (%p8158_p3), [#allocation4], 128  }
 0x146   : > { %7256 = vsyncadd (%p8158_p3), [#allocation4], 4294967168 }
 0x147   : > { %7258 = dma.done.wait (%p8158_p3), [#allocation7], 272  }
 0x148   : > { %7260 = vsyncadd (%p8158_p3), [#allocation7], 4294967024 }
 0x149   : > { %7262 = dma.done.wait (%p8158_p3), [#allocation10], 528  }
 0x14a   : > { %7264 = vsyncadd (%p8158_p3), [#allocation10], 4294966768 }
 0x14b   : > { %7266 = dma.done.wait (%p8158_p3), [#allocation13], 1040  }
 0x14c   : > { %7268 = vsyncadd (%p8158_p3), [#allocation13], 4294966256 }
 0x14d   : > { %7270 = dma.done.wait (%p8158_p3), [#allocation16], 528  }
 0x14e   : > { %7272 = vsyncadd (%p8158_p3), [#allocation16], 4294966768 }
 0x14f   : > { %7274 = dma.done.wait (%p8158_p3), [#allocation19], 32  }
 0x150   : > { %7276 = vsyncadd (%p8158_p3), [#allocation19], 4294967264 }
 0x151   : > { %7278 = dma.done.wait (%p8158_p3), [#allocation22], 32  }
 0x152   : > { %7280 = vsyncadd (%p8158_p3), [#allocation22], 4294967264  ;;  %s8159_s20 = sld [smem:[#allocation33_spill]] }
 0x158   : > { %p5698_p10 = scmp.ne.s32.totalorder %s8159_s20, 0 }
 0x159   : > { %v646_v0 = vld [vmem:[#allocation6] sm:$0xff] (!%p5698_p10)  ;;  %v647_v1 = vld [vmem:[#allocation6 + $0x8] sm:$0xff] (!%p5698_p10)  ;;  %v645_v2 = vld [vmem:[#allocation3] sm:$0xff] (!%p5698_p10)  ;;  %v7312_v3 = vmov (!%p5698_p10), 0.0|0.0   ;;  %vm7313_vm0 = vmmov (!%p5698_p10), 0   ;;  %v7314_v6 = vmov (!%p5698_p10), 0.0  }
 0x15a   : > { %644 = sbr.rel (%p5698_p10) target bundleno = 593 (0x251), region = 128  ;;  %6412 = vmatprep.subr.bf16.mxu0 (!%p5698_p10), %v7312_v3  ;;  %v660_v4 = vand.u32 (!%p5698_p10), 4294901760, %v646_v0  ;;  %v663_v5 = vand.u32 (!%p5698_p10), 4294901760, %v647_v1  ;;  %5960 = vmatprep.mubr.msk.f32.mxu0 (!%p5698_p10), %vm7313_vm0, %v7314_v6  ;;  %vm655_vm1 = vcmask (!%p5698_p10), 130048   ;;  %v5699_v27 = vld [vmem:[#allocation8] ss:$0 sm:$0xff] (!%p5698_p10) }
 0x15b   : > { %6403 = vmatprep.subr.bf16.mxu1 (!%p5698_p10), %v7312_v3  ;;  %v657_v7 = vsel (!%p5698_p10), %vm655_vm1, %v645_v2, 0  ;;  %5939 = vmatprep.mubr.msk.f32.mxu1 (!%p5698_p10), %vm7313_vm0, %v7314_v6  ;;  %vm1128_vm2 = vcmask (!%p5698_p10), 261120  }
 0x15c   : > { %v6404_v8 = vpack.c.bf16 (!%p5698_p10), %v663_v5, %v660_v4  ;;  %v738_v9 = vsub.f32 (!%p5698_p10), %v646_v0, %v660_v4  ;;  %v745_v10 = vsub.f32 (!%p5698_p10), %v647_v1, %v663_v5  ;;  %v726_v11 = vand.u32 (!%p5698_p10), 4294901760, %v657_v7 }
 0x15e   : > { %6414 = vmatpush3.bf16.msra.mxu0 (!%p5698_p10), %v6404_v8  ;;  %v727_v12 = vsub.f32 (!%p5698_p10), %v657_v7, %v726_v11  ;;  %6405 = vmatpush3.bf16.msra.mxu1 (!%p5698_p10), %v6404_v8  ;;  %v739_v13 = vand.u32 (!%p5698_p10), 4294901760, %v738_v9  ;;  %v746_v14 = vand.u32 (!%p5698_p10), 4294901760, %v745_v10  ;;  %v6410_v24 = vpack.c.bf16 (!%p5698_p10), %v745_v10, %v738_v9 }
 0x15f   : > { %6406 = vmatprep.subr.bf16.mxu1 (!%p5698_p10), %v7312_v3  ;;  %6415 = vmatprep.subr.bf16.mxu0 (!%p5698_p10), %v7312_v3 }
 0x160   : > { %v728_v15 = vand.u32 (!%p5698_p10), 4294901760, %v727_v12  ;;  %v740_v16 = vsub.f32 (!%p5698_p10), %v738_v9, %v739_v13  ;;  %v747_v17 = vsub.f32 (!%p5698_p10), %v745_v10, %v746_v14  ;;  %v6416_v18 = vpack.c.bf16 (!%p5698_p10), %v746_v14, %v739_v13 }
 0x162   : > { %5961 = vmatmul.mubr.f32.vlgmr.msra.gmra.mrb[0].mxu0 %v728_v15  ;;  %v729_v19 = vsub.f32 %v727_v12, %v728_v15  ;;  %v741_v20 = vand.u32 4294901760, %v740_v16  ;;  %v748_v21 = vand.u32 4294901760, %v747_v17 }
 0x163   : > { %6417 = vmatpush3.bf16.msra.mxu0 %v6416_v18  ;;  %5967 = vmatprep.mubr.msk.f32.mxu0 %vm7313_vm0, %v7314_v6 }
 0x164   : > { %v730_v22 = vand.u32 4294901760, %v729_v19  ;;  %v6407_v23 = vpack.c.bf16 %v748_v21, %v741_v20  ;;  %6418 = vmatprep.subr.bf16.mxu0 %v7312_v3 }
 0x166   : > { %5940 = vmatmul.mubr.f32.vlgmr.msra.gmra.mrb[0].mxu1 %v730_v22 }
 0x167   : > { %6408 = vmatpush3.bf16.msra.mxu1 %v6407_v23  ;;  %5946 = vmatprep.mubr.msk.f32.mxu1 %vm7313_vm0, %v7314_v6 }
 0x168   : > { %6409 = vmatprep.subr.bf16.mxu1 %v7312_v3 }
 0x16a   : > { %5968 = vmatmul.mubr.f32.vlgmr.msra.gmra.mrb[0].mxu0 %v726_v11 }
 0x16b   : > { %6420 = vmatpush3.bf16.msra.mxu0 %v6404_v8  ;;  %5974 = vmatprep.mubr.msk.f32.mxu0 %vm7313_vm0, %v7314_v6 }
 0x16e   : > { %5947 = vmatmul.mubr.f32.vlgmr.msra.gmra.mrb[0].mxu1 %v726_v11 }
 0x16f   : > { %6411 = vmatpush3.bf16.msra.mxu1 %v6410_v24  ;;  %5953 = vmatprep.mubr.msk.f32.mxu1 %vm7313_vm0, %v7314_v6 }
 0x172   : > { %5975 = vmatmul.mubr.f32.vlgmr.msra.gmra.mrb[0].mxu0 %v726_v11 }
 0x176   : > { %5954 = vmatmul.mubr.f32.vlgmr.msra.gmra.mrb[0].mxu1 %v727_v12 }
 0x245   : > { %v1114_v25 = vpop.f32.mrb[0].mxu0 }
 0x246   : > { %v5976_v26 = vpop.f32.mrb[1].mxu0 }
 0x249   : > { %v889_v28 = vpop.f32.mrb[0].mxu1 }
 0x24a   : > { %v6565_v29 = vadd.f32 %v5699_v27, %v889_v28  ;;  %v5955_v30 = vpop.f32.mrb[1].mxu1 }
 0x24c   : > { %v6566_v31 = vadd.f32 %v6565_v29, %v1114_v25 }
 0x24e   : > { %v1118_v32 = vmax.f32 %v6566_v31, 0.0 }
 0x250   : > { %1129 = vst.msk [vmem:[#allocation2] sm:$0xff] %vm1128_vm2, %v1118_v32 }
 0x251 PF: > { %s8160_s16 = sld [smem:[#allocation33_spill]] }
 0x257   : > { %p1130_p7 = scmp.eq.s32.totalorder %s8160_s16, 1 }
 0x258   : > { %v1141_v33 = vld [vmem:[#allocation2] sm:$0xff] (%p1130_p7)  ;;  %v1136_v34 = vlaneseq (%p1130_p7)  ;;  %v7315_v35 = vmov (%p1130_p7), 0.0   ;;  %vm7316_vm3 = vmmov (%p1130_p7), 0   ;;  %vm1144_vm4 = vcmask (%p1130_p7), 64512   ;;  %v2063_v61 = vld [vmem:[#allocation9] sm:$0xff] (%p1130_p7)  ;;  %v2064_v62 = vld [vmem:[#allocation9 + $0x8] sm:$0xff] (%p1130_p7) }
 0x259   : > { %1135 = sbr.rel (!%p1130_p7) target bundleno = 2770 (0xad2), region = 132  ;;  %5977 = vmatprep.subr.mxu0 (%p1130_p7), %v7315_v35  ;;  %v1149_v36 = vand.u32 (%p1130_p7), 4294901760, %v1141_v33  ;;  %5979 = vmatprep.mubr.msk.f32.mxu0 (%p1130_p7), %vm7316_vm3, %v7315_v35  ;;  %v2079_v63 = vand.u32 (%p1130_p7), 4294901760, %v2063_v61  ;;  %v2082_v0 = vand.u32 (%p1130_p7), 4294901760, %v2064_v62  ;;  %v2065_v3 = vld [vmem:[#allocation9 + $0x10] sm:$0xff] (%p1130_p7)  ;;  %v2066_v4 = vld [vmem:[#allocation9 + $0x18] sm:$0xff] (%p1130_p7) }
 0x25a   : > { %v1137_v37 = vand.u32 (%p1130_p7), 127, %v1136_v34  ;;  %6007 = vmatprep.subr.mxu1 (%p1130_p7), %v7315_v35  ;;  %6009 = vmatprep.mubr.msk.f32.mxu1 (%p1130_p7), %vm7316_vm3, %v7315_v35  ;;  %v1596_v48 = vshrl.u32 (%p1130_p7), %v1136_v34, 7  ;;  %v2085_v7 = vand.u32 (%p1130_p7), 4294901760, %v2065_v3  ;;  %v2088_v8 = vand.u32 (%p1130_p7), 4294901760, %v2066_v4  ;;  %v7816_v34 = vld [vmem:[#allocation18] sm:$0x1] (%p1130_p7) }
 0x25b   : > { %5978 = vmatpush3.msra.mxu0 (%p1130_p7), %v1149_v36  ;;  %v1226_v38 = vsub.f32 (%p1130_p7), %v1141_v33, %v1149_v36  ;;  %v2159_v1 = vsub.f32 (%p1130_p7), %v2063_v61, %v2079_v63  ;;  %v2166_v2 = vsub.f32 (%p1130_p7), %v2064_v62, %v2082_v0  ;;  %v7317_v13 = vmov (%p1130_p7), 0.0|0.0  }
 0x25c   : > { %vm1138_vm5 = vcmp.lt.s32.totalorder (%p1130_p7), %v1137_v37, 8  ;;  %5982 = vmatprep.subr.mxu0 (%p1130_p7), %v7315_v35  ;;  %v7777_v49 = vsub.s32 (%p1130_p7), 0, %v1596_v48  ;;  %v2173_v11 = vsub.f32 (%p1130_p7), %v2065_v3, %v2085_v7  ;;  %v2180_v12 = vsub.f32 (%p1130_p7), %v2066_v4, %v2088_v8 }
 0x25d   : > { %v7739_v39 = vsel (%p1130_p7), %vm1138_vm5, 1.0, %v7315_v35  ;;  %v1227_v40 = vand.u32 (%p1130_p7), 4294901760, %v1226_v38  ;;  %v2160_v5 = vand.u32 (%p1130_p7), 4294901760, %v2159_v1  ;;  %v2167_v6 = vand.u32 (%p1130_p7), 4294901760, %v2166_v2 }
 0x25e   : > { %v1146_v41 = vsel (%p1130_p7), %vm1144_vm4, %v7739_v39, 0  ;;  %v2174_v16 = vand.u32 (%p1130_p7), 4294901760, %v2173_v11  ;;  %v2181_v17 = vand.u32 (%p1130_p7), 4294901760, %v2180_v12  ;;  %v6422_v24 = vpack.c.bf16 (%p1130_p7), %v2082_v0, %v2079_v63 }
 0x25f   : > { %v7743_v42 = vsub.f32 (%p1130_p7), %v1146_v41, %v1146_v41  ;;  %v1228_v43 = vsub.f32 (%p1130_p7), %v1226_v38, %v1227_v40  ;;  %v2161_v9 = vsub.f32 (%p1130_p7), %v2159_v1, %v2160_v5  ;;  %v2168_v10 = vsub.f32 (%p1130_p7), %v2166_v2, %v2167_v6 }
 0x260   : > { %v2175_v19 = vsub.f32 %v2173_v11, %v2174_v16  ;;  %v2182_v20 = vsub.f32 %v2180_v12, %v2181_v17  ;;  %v6434_v25 = vpack.c.bf16 %v2166_v2, %v2159_v1  ;;  %v6425_v26 = vpack.c.bf16 %v2088_v8, %v2085_v7 }
 0x261   : > { %v7746_v44 = vand.u32 4294901760, %v7743_v42  ;;  %v1229_v46 = vand.u32 4294901760, %v1228_v43  ;;  %v2162_v14 = vand.u32 4294901760, %v2161_v9  ;;  %v2169_v15 = vand.u32 4294901760, %v2168_v10 }
 0x262   : > { %v2176_v21 = vand.u32 4294901760, %v2175_v19  ;;  %v2183_v22 = vand.u32 4294901760, %v2182_v20  ;;  %v6437_v27 = vpack.c.bf16 %v2180_v12, %v2173_v11  ;;  %v6446_v28 = vpack.c.bf16 %v2167_v6, %v2160_v5  ;;  %v3483_v20 = vld [vmem:[#allocation12 + $0x10] sm:$0xff] }
 0x263   : > { %v1217_v45 = vsub.f32 %v7743_v42, %v7746_v44  ;;  %v6428_v18 = vpack.c.bf16 %v2169_v15, %v2162_v14  ;;  %v6449_v29 = vpack.c.bf16 %v2181_v17, %v2174_v16  ;;  %vm2074_vm6 = vcmask 261120   ;;  %v3481_v14 = vld [vmem:[#allocation12] sm:$0xff]  ;;  %v3482_v15 = vld [vmem:[#allocation12 + $0x8] sm:$0xff] }
 0x264   : > { %v6431_v23 = vpack.c.bf16 %v2183_v22, %v2176_v21  ;;  %v3501_v16 = vand.u32 4294901760, %v3481_v14  ;;  %v3504_v17 = vand.u32 4294901760, %v3482_v15  ;;  %v3484_v21 = vld [vmem:[#allocation12 + $0x18] sm:$0xff]  ;;  %vm3496_vm7 = vcmask 523264  }
 0x265   : > { %v7750_v47 = vand.u32 4294901760, %v1217_v45 }
 0x266   : > { %v7906_v19 = vsub.f32 %v3482_v15, %v3504_v17 }
 0x267   : > { %5980 = vmatmul.mubr.f32.vlgmr.msra.gmra.mrb[0].mxu0 %v7750_v47 }
 0x268   : > { %5983 = vmatpush3.msra.mxu0 %v1229_v46  ;;  %5984 = vmatprep.mubr.msk.f32.mxu0 %vm7316_vm3, %v7315_v35 }
 0x269   : > { %5987 = vmatprep.subr.mxu0 %v7315_v35 }
 0x26f   : > { %5985 = vmatmul.mubr.msk.f32.vlgmr.msra.gmra.mrb[0].mxu0 %vm1144_vm4, %v7739_v39 }
 0x270   : > { %5988 = vmatpush3.msra.mxu0 %v1226_v38  ;;  %5989 = vmatprep.mubr.msk.f32.mxu0 %vm7316_vm3, %v7315_v35 }
 0x271   : > { %5992 = vmatprep.subr.mxu0 %v7315_v35 }
 0x277   : > { %5990 = vmatmul.mubr.f32.vlgmr.msra.gmra.mrb[0].mxu0 %v7743_v42 }
 0x278   : > { %5993 = vmatpush3.msra.mxu0 %v1149_v36  ;;  %5994 = vmatprep.mubr.msk.f32.mxu0 %vm7316_vm3, %v7315_v35 }
 0x279   : > { %5997 = vmatprep.subr.mxu0 %v7315_v35 }
 0x27f   : > { %5995 = vmatmul.mubr.f32.vlgmr.msra.gmra.mrb[0].mxu0 %v7746_v44 }
 0x280   : > { %5998 = vmatpush3.msra.mxu0 %v1227_v40  ;;  %5999 = vmatprep.mubr.msk.f32.mxu0 %vm7316_vm3, %v7315_v35  ;;  %v7820_v40 = vld [vmem:[#allocation20] ss:$0 sm:$0xff] }
 0x281   : > { %6002 = vmatprep.subr.mxu0 %v7315_v35 }
 0x287   : > { %6000 = vmatmul.mubr.msk.f32.vlgmr.msra.gmra.mrb[0].mxu0 %vm1144_vm4, %v7739_v39 }
 0x288   : > { %6003 = vmatpush3.msra.mxu0 %v1149_v36  ;;  %6004 = vmatprep.mubr.msk.f32.mxu0 %vm7316_vm3, %v7315_v35 }
 0x289   : > { %6427 = vmatprep.subr.bf16.mxu0 %v7317_v13 }
 0x28f   : > { %6005 = vmatmul.mubr.msk.f32.vlgmr.msra.gmra.mrb[0].mxu0 %vm1144_vm4, %v7739_v39 }
 0x290   : > { %6056 = vmatprep.mubr.msk.f32.mxu0 %vm7316_vm3, %v7315_v35  ;;  %6429 = vmatpush3.bf16.msra.mxu0 %v6428_v18  ;;  %v7904_v18 = vsub.f32 %v3481_v14, %v3501_v16 }
 0x291   : > { %6430 = vmatprep.subr.bf16.mxu0 %v7317_v13 }
 0x292   : > { %v3586_v22 = vand.u32 4294901760, %v7904_v18  ;;  %v6482_v14 = vpack.c.bf16 %v7906_v19, %v7904_v18 }
 0x294   : > { %6432 = vmatpush3.bf16.msra.mxu0 %v6431_v23  ;;  %v3593_v23 = vand.u32 4294901760, %v7906_v19 }
 0x295   : > { %6433 = vmatprep.subr.bf16.mxu0 %v7317_v13 }
 0x362   : > { %v1590_v50 = vpop.f32.mrb[0].mxu0 }
 0x363   : > { %v1594_v51 = vmul.f32 0.125, %v1590_v50  ;;  %v6006_v52 = vpop.f32.mrb[1].mxu0 }
 0x365   : > { %v1598_v53 = vrot.slane %v1594_v51, %v7777_v49 }
 0x367   : > { %v7780_v54 = vsub.f32 %v1141_v33, %v1598_v53 }
 0x369   : > { %v1600_v55 = vmul.f32 %v7780_v54, %v7780_v54 }
 0x36b   : > { %v1602_v56 = vand.u32 4294901760, %v1600_v55 }
 0x36d   : > { %6008 = vmatpush3.msra.mxu1 %v1602_v56  ;;  %v1679_v57 = vsub.f32 %v1600_v55, %v1602_v56  ;;  %v5709_v55 = vld [vmem:[#allocation11] ss:$0 sm:$0xff] }
 0x36e   : > { %6010 = vmatmul.mubr.f32.vlgmr.msra.gmra.mrb[0].mxu1 %v7750_v47  ;;  %6012 = vmatprep.subr.mxu1 %v7315_v35 }
 0x36f   : > { %v1680_v58 = vand.u32 4294901760, %v1679_v57  ;;  %6014 = vmatprep.mubr.msk.f32.mxu1 %vm7316_vm3, %v7315_v35 }
 0x371   : > { %v1681_v59 = vsub.f32 %v1679_v57, %v1680_v58 }
 0x373   : > { %v1682_v60 = vand.u32 4294901760, %v1681_v59 }
 0x375   : > { %6013 = vmatpush3.msra.mxu1 %v1682_v60 }
 0x376   : > { %6015 = vmatmul.mubr.msk.f32.vlgmr.msra.gmra.mrb[0].mxu1 %vm1144_vm4, %v7739_v39  ;;  %6017 = vmatprep.subr.mxu1 %v7315_v35 }
 0x377   : > { %6018 = vmatpush3.msra.mxu1 %v1679_v57  ;;  %6019 = vmatprep.mubr.msk.f32.mxu1 %vm7316_vm3, %v7315_v35 }
 0x378   : > { %6022 = vmatprep.subr.mxu1 %v7315_v35 }
 0x37e   : > { %6020 = vmatmul.mubr.f32.vlgmr.msra.gmra.mrb[0].mxu1 %v7743_v42 }
 0x37f   : > { %6023 = vmatpush3.msra.mxu1 %v1602_v56  ;;  %6024 = vmatprep.mubr.msk.f32.mxu1 %vm7316_vm3, %v7315_v35 }
 0x380   : > { %6027 = vmatprep.subr.mxu1 %v7315_v35 }
 0x386   : > { %6025 = vmatmul.mubr.f32.vlgmr.msra.gmra.mrb[0].mxu1 %v7746_v44 }
 0x387   : > { %6028 = vmatpush3.msra.mxu1 %v1680_v58  ;;  %6029 = vmatprep.mubr.msk.f32.mxu1 %vm7316_vm3, %v7315_v35 }
 0x388   : > { %6032 = vmatprep.subr.mxu1 %v7315_v35 }
 0x38e   : > { %6030 = vmatmul.mubr.msk.f32.vlgmr.msra.gmra.mrb[0].mxu1 %vm1144_vm4, %v7739_v39 }
 0x38f   : > { %6033 = vmatpush3.msra.mxu1 %v1602_v56  ;;  %6034 = vmatprep.mubr.msk.f32.mxu1 %vm7316_vm3, %v7315_v35 }
 0x390   : > { %6421 = vmatprep.subr.bf16.mxu1 %v7317_v13 }
 0x396   : > { %6035 = vmatmul.mubr.msk.f32.vlgmr.msra.gmra.mrb[0].mxu1 %vm1144_vm4, %v7739_v39 }
 0x397   : > { %6045 = vmatprep.mubr.msk.f32.mxu1 %vm7316_vm3, %v7315_v35  ;;  %6423 = vmatpush3.bf16.msra.mxu1 %v6422_v24 }
 0x398   : > { %6424 = vmatprep.subr.bf16.mxu1 %v7317_v13 }
 0x39b   : > { %6426 = vmatpush3.bf16.msra.mxu1 %v6425_v26 }
 0x39c   : > { %6103 = vmatprep.subr.mxu1 %v7315_v35 }
 0x469   : > { %v2043_v30 = vpop.f32.mrb[0].mxu1 }
 0x46a   : > { %v2047_v31 = vmul.f32 0.125, %v2043_v30  ;;  %v6036_v32 = vpop.f32.mrb[1].mxu1  ;;  %v3485_v30 = vld [vmem:[#allocation12 + $0x20] sm:$0xff] }
 0x46c   : > { %v2048_v33 = vadd.f32 1e-05, %v2047_v31  ;;  %v3486_v31 = vld [vmem:[#allocation12 + $0x28] sm:$0xff] }
 0x46e   : > { %6845 = vrsqrt.f32 %v2048_v33 }
 0x478   : > { %v6846_v36 = vpop.eup %6845 }
 0x479   : > { %v2050_v37 = vmul.f32 %v6846_v36, %v7816_v34 }
 0x47b   : > { %v2054_v38 = vrot.slane %v2050_v37, %v7777_v49 }
 0x47d   : > { %v2055_v41 = vmul.f32 %v2054_v38, %v7780_v54  ;;  %v3513_v38 = vand.u32 4294901760, %v3485_v30 }
 0x47f   : > { %v2062_v43 = vadd.f32 %v7820_v40, %v2055_v41  ;;  %v3516_v41 = vand.u32 4294901760, %v3486_v31 }
 0x481   : > { %v2076_v45 = vsel %vm2074_vm6, %v2062_v43, 0  ;;  %v7954_v15 = vpack.c.bf16 %v3516_v41, %v3513_v38 }
 0x482   : > { %v2147_v46 = vand.u32 4294901760, %v2076_v45 }
 0x484   : > { %v2148_v48 = vsub.f32 %v2076_v45, %v2147_v46  ;;  %6057 = vmatmul.mubr.f32.vlgmr.msra.gmra.mrb[2].mxu0 %v2147_v46 }
 0x485   : > { %6435 = vmatpush3.bf16.msra.mxu0 %v6434_v25  ;;  %6067 = vmatprep.mubr.msk.f32.mxu0 %vm7316_vm3, %v7315_v35  ;;  %v3510_v25 = vand.u32 4294901760, %v3484_v21 }
 0x486   : > { %6436 = vmatprep.subr.bf16.mxu0 %v7317_v13  ;;  %v2149_v50 = vand.u32 4294901760, %v2148_v48 }
 0x488   : > { %v2150_v51 = vsub.f32 %v2148_v48, %v2149_v50 }
 0x489   : > { %6438 = vmatpush3.bf16.msra.mxu0 %v6437_v27  ;;  %v3594_v27 = vsub.f32 %v7906_v19, %v3593_v23 }
 0x48a   : > { %v2151_v52 = vand.u32 4294901760, %v2150_v51  ;;  %6439 = vmatprep.subr.bf16.mxu0 %v7317_v13  ;;  %v3487_v51 = vld [vmem:[#allocation12 + $0x30] sm:$0xff] }
 0x48b   : > { %v3595_v33 = vand.u32 4294901760, %v3594_v27 }
 0x48c   : > { %6046 = vmatmul.mubr.f32.vlgmr.msra.gmra.mrb[2].mxu1 %v2151_v52  ;;  %6068 = vmatmul.mubr.f32.vlgmr.msra.gmra.mrb[2].mxu0 %v2148_v48  ;;  %v7924_v48 = vsub.f32 %v3485_v30, %v3513_v38  ;;  %v3488_v52 = vld [vmem:[#allocation12 + $0x38] sm:$0xff] }
 0x48d   : > { %6441 = vmatpush3.bf16.msra.mxu0 %v6422_v24  ;;  %6078 = vmatprep.mubr.msk.f32.mxu0 %vm7316_vm3, %v7315_v35 }
 0x48e   : > { %6442 = vmatprep.subr.bf16.mxu0 %v7317_v13  ;;  %6105 = vmatprep.mubr.msk.f32.mxu1 %vm7316_vm3, %v7315_v35 }
 0x491   : > { %6444 = vmatpush3.bf16.msra.mxu0 %v6425_v26 }
 0x492   : > { %6445 = vmatprep.subr.bf16.mxu0 %v7317_v13 }
 0x494   : > { %6079 = vmatmul.mubr.f32.vlgmr.msra.gmra.mrb[2].mxu0 %v2149_v50  ;;  %v7926_v50 = vsub.f32 %v3486_v31, %v3516_v41 }
 0x495   : > { %6447 = vmatpush3.bf16.msra.mxu0 %v6446_v28  ;;  %6089 = vmatprep.mubr.msk.f32.mxu0 %vm7316_vm3, %v7315_v35 }
 0x496   : > { %6448 = vmatprep.subr.bf16.mxu0 %v7317_v13 }
 0x499   : > { %6450 = vmatpush3.bf16.msra.mxu0 %v6449_v29  ;;  %v7918_v29 = vsub.f32 %v3484_v21, %v3510_v25 }
 0x49a   : > { %6451 = vmatprep.subr.bf16.mxu0 %v7317_v13 }
 0x49b   : > { %v3607_v37 = vand.u32 4294901760, %v7918_v29 }
 0x49c   : > { %6090 = vmatmul.mubr.f32.vlgmr.msra.gmra.mrb[2].mxu0 %v2147_v46 }
 0x49d   : > { %6453 = vmatpush3.bf16.msra.mxu0 %v6422_v24  ;;  %6100 = vmatprep.mubr.msk.f32.mxu0 %vm7316_vm3, %v7315_v35  ;;  %v3507_v24 = vand.u32 4294901760, %v3483_v20 }
 0x49e   : > { %6454 = vmatprep.subr.bf16.mxu0 %v7317_v13 }
 0x49f   : > { %v7916_v28 = vsub.f32 %v3483_v20, %v3507_v24  ;;  %v6488_v20 = vpack.c.bf16 %v7926_v50, %v7924_v48 }
 0x4a1   : > { %6456 = vmatpush3.bf16.msra.mxu0 %v6425_v26  ;;  %v3587_v26 = vsub.f32 %v7904_v18, %v3586_v22  ;;  %v3600_v36 = vand.u32 4294901760, %v7916_v28 }
 0x4a2   : > { %6469 = vmatprep.subr.bf16.mxu0 %v7317_v13 }
 0x4a3   : > { %v3588_v32 = vand.u32 4294901760, %v3587_v26  ;;  %v3601_v45 = vsub.f32 %v7916_v28, %v3600_v36 }
 0x4a4   : > { %6101 = vmatmul.mubr.f32.vlgmr.msra.gmra.mrb[2].mxu0 %v2147_v46  ;;  %v3608_v46 = vsub.f32 %v7918_v29, %v3607_v37 }
 0x4a5   : > { %6198 = vmatprep.mubr.msk.f32.mxu0 %vm7316_vm3, %v7315_v35  ;;  %v6470_v43 = vpack.c.bf16 %v3595_v33, %v3588_v32  ;;  %v2564_v32 = vld [vmem:[#allocation21] sm:$0x1] }
 0x4a7   : > { %6471 = vmatpush3.bf16.msra.mxu0 %v6470_v43  ;;  %v5716_v43 = vld [vmem:[#allocation23] ss:$0 sm:$0xff] }
 0x4a8   : > { %6472 = vmatprep.subr.bf16.mxu0 %v7317_v13 }
 0x55f   : > { %v2153_v53 = vpop.f32.mrb[2].mxu1 }
 0x560   : > { %v6047_v54 = vpop.f32.mrb[3].mxu1  ;;  %v2154_v56 = vadd.f32 %v5709_v55, %v2153_v53  ;;  %v3602_v53 = vand.u32 4294901760, %v3601_v45  ;;  %v3519_v55 = vand.u32 4294901760, %v3487_v51 }
 0x561   : > { %v3609_v54 = vand.u32 4294901760, %v3608_v46 }
 0x577   : > { %v2559_v57 = vpop.f32.mrb[2].mxu0 }
 0x578   : > { %v6576_v58 = vadd.f32 %v2559_v57, %v2154_v56  ;;  %v6102_v59 = vpop.f32.mrb[3].mxu0  ;;  %v3522_v56 = vand.u32 4294901760, %v3488_v52  ;;  %v3614_v57 = vand.u32 4294901760, %v7924_v48 }
 0x579   : > { %v6473_v59 = vpack.c.bf16 %v3609_v54, %v3602_v53 }
 0x57a   : > { %v2563_v60 = vmax.f32 %v6576_v58, 0.0  ;;  %v3621_v58 = vand.u32 4294901760, %v7926_v50 }
 0x57b   : > { %6474 = vmatpush3.bf16.msra.mxu0 %v6473_v59 }
 0x57c   : > { %v2567_v61 = vand.u32 4294901760, %v2563_v60  ;;  %6475 = vmatprep.subr.bf16.mxu0 %v7317_v13  ;;  %v6512_v26 = vpack.c.bf16 %v3621_v58, %v3614_v57 }
 0x57e   : > { %v2644_v62 = vsub.f32 %v2563_v60, %v2567_v61  ;;  %6104 = vmatpush3.msra.mxu1 %v2567_v61 }
 0x57f   : > { %6106 = vmatmul.mubr.f32.vlgmr.msra.gmra.mrb[4].mxu1 %v7750_v47  ;;  %6108 = vmatprep.subr.mxu1 %v7315_v35 }
 0x580   : > { %v2645_v63 = vand.u32 4294901760, %v2644_v62  ;;  %6110 = vmatprep.mubr.msk.f32.mxu1 %vm7316_vm3, %v7315_v35 }
 0x582   : > { %v2646_v0 = vsub.f32 %v2644_v62, %v2645_v63 }
 0x584   : > { %v2647_v1 = vand.u32 4294901760, %v2646_v0  ;;  %v7937_v0 = vpack.c.bf16 %v3504_v17, %v3501_v16  ;;  %v6485_v16 = vpack.c.bf16 %v7918_v29, %v7916_v28  ;;  %v7960_v17 = vpack.c.bf16 %v3522_v56, %v3519_v55 }
 0x586   : > { %6109 = vmatpush3.msra.mxu1 %v2647_v1 }
 0x587   : > { %6111 = vmatmul.mubr.msk.f32.vlgmr.msra.gmra.mrb[4].mxu1 %vm1144_vm4, %v7739_v39  ;;  %6113 = vmatprep.subr.mxu1 %v7315_v35 }
 0x588   : > { %6114 = vmatpush3.msra.mxu1 %v2644_v62  ;;  %6115 = vmatprep.mubr.msk.f32.mxu1 %vm7316_vm3, %v7315_v35  ;;  %v3615_v62 = vsub.f32 %v7924_v48, %v3614_v57 }
 0x589   : > { %6118 = vmatprep.subr.mxu1 %v7315_v35 }
 0x58f   : > { %6116 = vmatmul.mubr.f32.vlgmr.msra.gmra.mrb[4].mxu1 %v7743_v42 }
 0x590   : > { %6119 = vmatpush3.msra.mxu1 %v2567_v61  ;;  %6120 = vmatprep.mubr.msk.f32.mxu1 %vm7316_vm3, %v7315_v35 }
 0x591   : > { %6123 = vmatprep.subr.mxu1 %v7315_v35 }
 0x597   : > { %6121 = vmatmul.mubr.f32.vlgmr.msra.gmra.mrb[4].mxu1 %v7746_v44 }
 0x598   : > { %6124 = vmatpush3.msra.mxu1 %v2645_v63  ;;  %6125 = vmatprep.mubr.msk.f32.mxu1 %vm7316_vm3, %v7315_v35  ;;  %v3622_v63 = vsub.f32 %v7926_v50, %v3621_v58  ;;  %v5717_v50 = vld [vmem:[#allocation14] ss:$0 sm:$0xff] }
 0x599   : > { %6128 = vmatprep.subr.mxu1 %v7315_v35 }
 0x59f   : > { %6126 = vmatmul.mubr.msk.f32.vlgmr.msra.gmra.mrb[4].mxu1 %vm1144_vm4, %v7739_v39 }
 0x5a0   : > { %6129 = vmatpush3.msra.mxu1 %v2567_v61  ;;  %6130 = vmatprep.mubr.msk.f32.mxu1 %vm7316_vm3, %v7315_v35  ;;  %v7933_v61 = vsub.f32 %v3488_v52, %v3522_v56 }
 0x5a1   : > { %6133 = vmatprep.subr.mxu1 %v7315_v35 }
 0x5a7   : > { %6131 = vmatmul.mubr.msk.f32.vlgmr.msra.gmra.mrb[4].mxu1 %vm1144_vm4, %v7739_v39 }
 0x5a8   : > { %6135 = vmatprep.mubr.msk.f32.mxu1 %vm7316_vm3, %v7315_v35 }
 0x67a   : > { %v3008_v2 = vpop.f32.mrb[4].mxu1 }
 0x67b   : > { %v3012_v3 = vmul.f32 0.125, %v3008_v2  ;;  %v6132_v4 = vpop.f32.mrb[5].mxu1  ;;  %v3635_v2 = vand.u32 4294901760, %v7933_v61 }
 0x67c   : > { %v3623_v4 = vand.u32 4294901760, %v3622_v63 }
 0x67d   : > { %v3016_v5 = vrot.slane %v3012_v3, %v7777_v49  ;;  %v3616_v3 = vand.u32 4294901760, %v3615_v62 }
 0x67f   : > { %v7873_v6 = vsub.f32 %v2563_v60, %v3016_v5  ;;  %v7931_v60 = vsub.f32 %v3487_v51, %v3519_v55 }
 0x681   : > { %v3018_v7 = vmul.f32 %v7873_v6, %v7873_v6  ;;  %v3628_v1 = vand.u32 4294901760, %v7931_v60  ;;  %v6491_v21 = vpack.c.bf16 %v7933_v61, %v7931_v60 }
 0x683   : > { %v3020_v8 = vand.u32 4294901760, %v3018_v7  ;;  %v3629_v5 = vsub.f32 %v7931_v60, %v3628_v1  ;;  %v6515_v27 = vpack.c.bf16 %v3635_v2, %v3628_v1 }
 0x685   : > { %6134 = vmatpush3.msra.mxu1 %v3020_v8  ;;  %v3097_v9 = vsub.f32 %v3018_v7, %v3020_v8  ;;  %v3636_v7 = vsub.f32 %v7933_v61, %v3635_v2 }
 0x686   : > { %6136 = vmatmul.mubr.f32.vlgmr.msra.gmra.mrb[6].mxu1 %v7750_v47  ;;  %6138 = vmatprep.subr.mxu1 %v7315_v35 }
 0x687   : > { %v3098_v10 = vand.u32 4294901760, %v3097_v9  ;;  %6140 = vmatprep.mubr.msk.f32.mxu1 %vm7316_vm3, %v7315_v35 }
 0x689   : > { %v3099_v11 = vsub.f32 %v3097_v9, %v3098_v10 }
 0x68b   : > { %v3100_v12 = vand.u32 4294901760, %v3099_v11  ;;  %v3637_v11 = vand.u32 4294901760, %v3636_v7 }
 0x68d   : > { %6139 = vmatpush3.msra.mxu1 %v3100_v12 }
 0x68e   : > { %6141 = vmatmul.mubr.msk.f32.vlgmr.msra.gmra.mrb[6].mxu1 %vm1144_vm4, %v7739_v39  ;;  %6143 = vmatprep.subr.mxu1 %v7315_v35 }
 0x68f   : > { %6144 = vmatpush3.msra.mxu1 %v3097_v9  ;;  %6145 = vmatprep.mubr.msk.f32.mxu1 %vm7316_vm3, %v7315_v35  ;;  %v6476_v9 = vpack.c.bf16 %v3623_v4, %v3616_v3 }
 0x690   : > { %6148 = vmatprep.subr.mxu1 %v7315_v35 }
 0x691   : > { %6477 = vmatpush3.bf16.msra.mxu0 %v6476_v9 }
 0x692   : > { %6478 = vmatprep.subr.bf16.mxu0 %v7317_v13 }
 0x696   : > { %6146 = vmatmul.mubr.f32.vlgmr.msra.gmra.mrb[6].mxu1 %v7743_v42 }
 0x697   : > { %6149 = vmatpush3.msra.mxu1 %v3020_v8  ;;  %6150 = vmatprep.mubr.msk.f32.mxu1 %vm7316_vm3, %v7315_v35 }
 0x698   : > { %6153 = vmatprep.subr.mxu1 %v7315_v35 }
 0x69e   : > { %6151 = vmatmul.mubr.f32.vlgmr.msra.gmra.mrb[6].mxu1 %v7746_v44 }
 0x69f   : > { %6154 = vmatpush3.msra.mxu1 %v3098_v10  ;;  %6155 = vmatprep.mubr.msk.f32.mxu1 %vm7316_vm3, %v7315_v35  ;;  %v3630_v10 = vand.u32 4294901760, %v3629_v5 }
 0x6a0   : > { %6158 = vmatprep.subr.mxu1 %v7315_v35 }
 0x6a1   : > { %v6479_v12 = vpack.c.bf16 %v3637_v11, %v3630_v10 }
 0x6a3   : > { %6480 = vmatpush3.bf16.msra.mxu0 %v6479_v12 }
 0x6a4   : > { %6481 = vmatprep.subr.bf16.mxu0 %v7317_v13 }
 0x6a6   : > { %6156 = vmatmul.mubr.msk.f32.vlgmr.msra.gmra.mrb[6].mxu1 %vm1144_vm4, %v7739_v39 }
 0x6a7   : > { %6159 = vmatpush3.msra.mxu1 %v3020_v8  ;;  %6160 = vmatprep.mubr.msk.f32.mxu1 %vm7316_vm3, %v7315_v35  ;;  %v7945_v8 = vpack.c.bf16 %v3510_v25, %v3507_v24  ;;  %v6506_v24 = vpack.c.bf16 %v3593_v23, %v3586_v22  ;;  %v6509_v25 = vpack.c.bf16 %v3607_v37, %v3600_v36 }
 0x6a8   : > { %6457 = vmatprep.subr.bf16.mxu1 %v7317_v13 }
 0x6ae   : > { %6161 = vmatmul.mubr.msk.f32.vlgmr.msra.gmra.mrb[6].mxu1 %vm1144_vm4, %v7739_v39 }
 0x6af   : > { %6179 = vmatprep.mubr.msk.f32.mxu1 %vm7316_vm3, %v7315_v35  ;;  %6459 = vmatpush3.bf16.msra.mxu1 %v7937_v0 }
 0x6b0   : > { %6460 = vmatprep.subr.bf16.mxu1 %v7317_v13 }
 0x6b3   : > { %6462 = vmatpush3.bf16.msra.mxu1 %v7945_v8 }
 0x6b4   : > { %6463 = vmatprep.subr.bf16.mxu1 %v7317_v13 }
 0x6b7   : > { %6465 = vmatpush3.bf16.msra.mxu1 %v7954_v15 }
 0x6b8   : > { %6466 = vmatprep.subr.bf16.mxu1 %v7317_v13 }
 0x6bb   : > { %6468 = vmatpush3.bf16.msra.mxu1 %v7960_v17 }
 0x6bc   : > { %6277 = vmatprep.subr.mxu1 %v7315_v35 }
 0x781   : > { %v3461_v28 = vpop.f32.mrb[6].mxu1 }
 0x782   : > { %v3465_v29 = vmul.f32 0.125, %v3461_v28  ;;  %v6162_v30 = vpop.f32.mrb[7].mxu1 }
 0x784   : > { %v3466_v31 = vadd.f32 1e-05, %v3465_v29 }
 0x786   : > { %6847 = vrsqrt.f32 %v3466_v31 }
 0x790   : > { %v6848_v33 = vpop.eup %6847 }
 0x791   : > { %v3468_v38 = vmul.f32 %v6848_v33, %v2564_v32 }
 0x793   : > { %v3472_v41 = vrot.slane %v3468_v38, %v7777_v49 }
 0x795   : > { %v3473_v45 = vmul.f32 %v3472_v41, %v7873_v6 }
 0x797   : > { %v3480_v18 = vadd.f32 %v5716_v43, %v3473_v45 }
 0x799   : > { %v3498_v19 = vsel %vm3496_vm7, %v3480_v18, 0 }
 0x79a   : > { %v3573_v22 = vand.u32 4294901760, %v3498_v19 }
 0x79c   : > { %v3574_v23 = vsub.f32 %v3498_v19, %v3573_v22  ;;  %6199 = vmatmul.mubr.f32.vlgmr.msra.gmra.mrb[4].mxu0 %v3573_v22 }
 0x79d   : > { %6483 = vmatpush3.bf16.msra.mxu0 %v6482_v14  ;;  %6217 = vmatprep.mubr.msk.f32.mxu0 %vm7316_vm3, %v7315_v35 }
 0x79e   : > { %6484 = vmatprep.subr.bf16.mxu0 %v7317_v13  ;;  %v3575_v36 = vand.u32 4294901760, %v3574_v23 }
 0x7a0   : > { %v3576_v37 = vsub.f32 %v3574_v23, %v3575_v36 }
 0x7a1   : > { %6486 = vmatpush3.bf16.msra.mxu0 %v6485_v16 }
 0x7a2   : > { %6487 = vmatprep.subr.bf16.mxu0 %v7317_v13  ;;  %v3577_v46 = vand.u32 4294901760, %v3576_v37 }
 0x7a4   : > { %6180 = vmatmul.mubr.f32.vlgmr.msra.gmra.mrb[8].mxu1 %v3577_v46 }
 0x7a5   : > { %6489 = vmatpush3.bf16.msra.mxu0 %v6488_v20  ;;  %6279 = vmatprep.mubr.msk.f32.mxu1 %vm7316_vm3, %v7315_v35 }
 0x7a6   : > { %6490 = vmatprep.subr.bf16.mxu0 %v7317_v13 }
 0x7a9   : > { %6492 = vmatpush3.bf16.msra.mxu0 %v6491_v21 }
 0x7aa   : > { %6493 = vmatprep.subr.bf16.mxu0 %v7317_v13 }
 0x7ac   : > { %6218 = vmatmul.mubr.f32.vlgmr.msra.gmra.mrb[4].mxu0 %v3574_v23 }
 0x7ad   : > { %6495 = vmatpush3.bf16.msra.mxu0 %v7937_v0  ;;  %6236 = vmatprep.mubr.msk.f32.mxu0 %vm7316_vm3, %v7315_v35 }
 0x7ae   : > { %6496 = vmatprep.subr.bf16.mxu0 %v7317_v13 }
 0x7b1   : > { %6498 = vmatpush3.bf16.msra.mxu0 %v7945_v8 }
 0x7b2   : > { %6499 = vmatprep.subr.bf16.mxu0 %v7317_v13 }
 0x7b5   : > { %6501 = vmatpush3.bf16.msra.mxu0 %v7954_v15 }
 0x7b6   : > { %6502 = vmatprep.subr.bf16.mxu0 %v7317_v13 }
 0x7b9   : > { %6504 = vmatpush3.bf16.msra.mxu0 %v7960_v17 }
 0x7ba   : > { %6505 = vmatprep.subr.bf16.mxu0 %v7317_v13 }
 0x7bc   : > { %6237 = vmatmul.mubr.f32.vlgmr.msra.gmra.mrb[4].mxu0 %v3575_v36 }
 0x7bd   : > { %6507 = vmatpush3.bf16.msra.mxu0 %v6506_v24  ;;  %6255 = vmatprep.mubr.msk.f32.mxu0 %vm7316_vm3, %v7315_v35 }
 0x7be   : > { %6508 = vmatprep.subr.bf16.mxu0 %v7317_v13 }
 0x7c1   : > { %6510 = vmatpush3.bf16.msra.mxu0 %v6509_v25 }
 0x7c2   : > { %6511 = vmatprep.subr.bf16.mxu0 %v7317_v13 }
 0x7c5   : > { %6513 = vmatpush3.bf16.msra.mxu0 %v6512_v26 }
 0x7c6   : > { %6514 = vmatprep.subr.bf16.mxu0 %v7317_v13 }
 0x7c9   : > { %6516 = vmatpush3.bf16.msra.mxu0 %v6515_v27 }
 0x7ca   : > { %6517 = vmatprep.subr.bf16.mxu0 %v7317_v13 }
 0x7cc   : > { %6256 = vmatmul.mubr.f32.vlgmr.msra.gmra.mrb[4].mxu0 %v3573_v22 }
 0x7cd   : > { %6519 = vmatpush3.bf16.msra.mxu0 %v7937_v0  ;;  %6274 = vmatprep.mubr.msk.f32.mxu0 %vm7316_vm3, %v7315_v35 }
 0x7ce   : > { %6520 = vmatprep.subr.bf16.mxu0 %v7317_v13 }
 0x7d1   : > { %6522 = vmatpush3.bf16.msra.mxu0 %v7945_v8 }
 0x7d2   : > { %6523 = vmatprep.subr.bf16.mxu0 %v7317_v13 }
 0x7d5   : > { %6525 = vmatpush3.bf16.msra.mxu0 %v7954_v15 }
 0x7d6   : > { %6526 = vmatprep.subr.bf16.mxu0 %v7317_v13 }
 0x7d9   : > { %6528 = vmatpush3.bf16.msra.mxu0 %v7960_v17 }
 0x7dc   : > { %6275 = vmatmul.mubr.f32.vlgmr.msra.gmra.mrb[4].mxu0 %v3573_v22 }
 0x877   : > { %v3579_v6 = vpop.f32.mrb[8].mxu1 }
 0x878   : > { %v6181_v48 = vpop.f32.mrb[9].mxu1  ;;  %v3580_v51 = vadd.f32 %v5717_v50, %v3579_v6 }
 0x8af   : > { %v4033_v52 = vpop.f32.mrb[4].mxu0 }
 0x8b0   : > { %v6578_v53 = vadd.f32 %v4033_v52, %v3580_v51  ;;  %v6276_v54 = vpop.f32.mrb[5].mxu0 }
 0x8b2   : > { %v4037_v55 = vmax.f32 %v6578_v53, 0.0 }
 0x8b4   : > { %v4039_v56 = vand.u32 4294901760, %v4037_v55 }
 0x8b6   : > { %v4116_v57 = vsub.f32 %v4037_v55, %v4039_v56  ;;  %6278 = vmatpush3.msra.mxu1 %v4039_v56 }
 0x8b7   : > { %6280 = vmatmul.mubr.f32.vlgmr.msra.gmra.mrb[10].mxu1 %v7750_v47  ;;  %6282 = vmatprep.subr.mxu1 %v7315_v35 }
 0x8b8   : > { %v4117_v58 = vand.u32 4294901760, %v4116_v57  ;;  %6284 = vmatprep.mubr.msk.f32.mxu1 %vm7316_vm3, %v7315_v35 }
 0x8ba   : > { %v4118_v13 = vsub.f32 %v4116_v57, %v4117_v58 }
 0x8bc   : > { %v4119_v59 = vand.u32 4294901760, %v4118_v13 }
 0x8be   : > { %6283 = vmatpush3.msra.mxu1 %v4119_v59 }
 0x8bf   : > { %6285 = vmatmul.mubr.msk.f32.vlgmr.msra.gmra.mrb[10].mxu1 %vm1144_vm4, %v7739_v39  ;;  %6287 = vmatprep.subr.mxu1 %v7315_v35 }
 0x8c0   : > { %6288 = vmatpush3.msra.mxu1 %v4116_v57  ;;  %6289 = vmatprep.mubr.msk.f32.mxu1 %vm7316_vm3, %v7315_v35 }
 0x8c1   : > { %6292 = vmatprep.subr.mxu1 %v7315_v35 }
 0x8c7   : > { %6290 = vmatmul.mubr.f32.vlgmr.msra.gmra.mrb[10].mxu1 %v7743_v42 }
 0x8c8   : > { %6293 = vmatpush3.msra.mxu1 %v4039_v56  ;;  %6294 = vmatprep.mubr.msk.f32.mxu1 %vm7316_vm3, %v7315_v35 }
 0x8c9   : > { %6297 = vmatprep.subr.mxu1 %v7315_v35 }
 0x8cf   : > { %6295 = vmatmul.mubr.f32.vlgmr.msra.gmra.mrb[10].mxu1 %v7746_v44 }
 0x8d0   : > { %6298 = vmatpush3.msra.mxu1 %v4117_v58  ;;  %6299 = vmatprep.mubr.msk.f32.mxu1 %vm7316_vm3, %v7315_v35 }
 0x8d1   : > { %6302 = vmatprep.subr.mxu1 %v7315_v35 }
 0x8d7   : > { %6300 = vmatmul.mubr.msk.f32.vlgmr.msra.gmra.mrb[10].mxu1 %vm1144_vm4, %v7739_v39 }
 0x8d8   : > { %6303 = vmatpush3.msra.mxu1 %v4039_v56  ;;  %6304 = vmatprep.mubr.msk.f32.mxu1 %vm7316_vm3, %v7315_v35 }
 0x8d9   : > { %6307 = vmatprep.subr.mxu1 %v7315_v35 }
 0x8df   : > { %6305 = vmatmul.mubr.msk.f32.vlgmr.msra.gmra.mrb[10].mxu1 %vm1144_vm4, %v7739_v39 }
 0x8e0   : > { %6309 = vmatprep.mubr.msk.f32.mxu1 %vm7316_vm3, %v7315_v35 }
 0x9b2   : > { %v4480_v60 = vpop.f32.mrb[10].mxu1 }
 0x9b3   : > { %v4484_v61 = vmul.f32 0.125, %v4480_v60  ;;  %v6306_v62 = vpop.f32.mrb[11].mxu1 }
 0x9b5   : > { %v4488_v63 = vrot.slane %v4484_v61, %v7777_v49 }
 0x9b7   : > { %v4489_v0 = vsub.f32 %v4037_v55, %v4488_v63 }
 0x9b9   : > { %v4490_v1 = vmul.f32 %v4489_v0, %v4489_v0 }
 0x9bb   : > { %v4492_v2 = vand.u32 4294901760, %v4490_v1 }
 0x9bd   : > { %6308 = vmatpush3.msra.mxu1 %v4492_v2  ;;  %v4569_v3 = vsub.f32 %v4490_v1, %v4492_v2 }
 0x9be   : > { %6310 = vmatmul.mubr.f32.vlgmr.msra.gmra.mrb[12].mxu1 %v7750_v47  ;;  %6312 = vmatprep.subr.mxu1 %v7315_v35 }
 0x9bf   : > { %v4570_v4 = vand.u32 4294901760, %v4569_v3  ;;  %6314 = vmatprep.mubr.msk.f32.mxu1 %vm7316_vm3, %v7315_v35 }
 0x9c1   : > { %v4571_v5 = vsub.f32 %v4569_v3, %v4570_v4 }
 0x9c3   : > { %v4572_v7 = vand.u32 4294901760, %v4571_v5 }
 0x9c5   : > { %6313 = vmatpush3.msra.mxu1 %v4572_v7 }
 0x9c6   : > { %6315 = vmatmul.mubr.msk.f32.vlgmr.msra.gmra.mrb[12].mxu1 %vm1144_vm4, %v7739_v39  ;;  %6317 = vmatprep.subr.mxu1 %v7315_v35 }
 0x9c7   : > { %6318 = vmatpush3.msra.mxu1 %v4569_v3  ;;  %6319 = vmatprep.mubr.msk.f32.mxu1 %vm7316_vm3, %v7315_v35 }
 0x9c8   : > { %6322 = vmatprep.subr.mxu1 %v7315_v35 }
 0x9ce   : > { %6320 = vmatmul.mubr.f32.vlgmr.msra.gmra.mrb[12].mxu1 %v7743_v42 }
 0x9cf   : > { %6323 = vmatpush3.msra.mxu1 %v4492_v2  ;;  %6324 = vmatprep.mubr.msk.f32.mxu1 %vm7316_vm3, %v7315_v35 }
 0x9d0   : > { %6327 = vmatprep.subr.mxu1 %v7315_v35 }
 0x9d6   : > { %6325 = vmatmul.mubr.f32.vlgmr.msra.gmra.mrb[12].mxu1 %v7746_v44 }
 0x9d7   : > { %6328 = vmatpush3.msra.mxu1 %v4570_v4  ;;  %6329 = vmatprep.mubr.msk.f32.mxu1 %vm7316_vm3, %v7315_v35 }
 0x9d8   : > { %6332 = vmatprep.subr.mxu1 %v7315_v35 }
 0x9de   : > { %6330 = vmatmul.mubr.msk.f32.vlgmr.msra.gmra.mrb[12].mxu1 %vm1144_vm4, %v7739_v39 }
 0x9df   : > { %6333 = vmatpush3.msra.mxu1 %v4492_v2  ;;  %6334 = vmatprep.mubr.msk.f32.mxu1 %vm7316_vm3, %v7315_v35 }
 0x9e6   : > { %6335 = vmatmul.mubr.msk.f32.vlgmr.msra.gmra.mrb[12].mxu1 %vm1144_vm4, %v7739_v39 }
 0xab9   : > { %v4933_v42 = vpop.f32.mrb[12].mxu1 }
 0xaba   : > { %v4937_v47 = vmul.f32 0.125, %v4933_v42  ;;  %v6336_v8 = vpop.f32.mrb[13].mxu1 }
 0xabc   : > { %v4938_v44 = vadd.f32 1e-05, %v4937_v47 }
 0xabe   : > { %6849 = vrsqrt.f32 %v4938_v44 }
 0xac8   : > { %v6850_v9 = vpop.eup %6849 }
 0xac9   : > { %v4940_v10 = vmul.f32 %v6850_v9, %v7816_v34 }
 0xacb   : > { %v4944_v11 = vrot.slane %v4940_v10, %v7777_v49 }
 0xacd   : > { %v4945_v12 = vmul.f32 %v4944_v11, %v4489_v0 }
 0xacf   : > { %v4946_v14 = vadd.f32 %v7820_v40, %v4945_v12 }
 0xad1   : > { %4947 = vst.msk [vmem:[#allocation2] sm:$0xff] %vm2074_vm6, %v4946_v14 }
 0xad2 PF: > { %s8161_s24 = sld [smem:[#allocation33_spill]] }
 0xad8   : > { %p5724_p4 = scmp.ne.s32.totalorder %s8161_s24, 1 }
 0xad9   : > { %v4953_v35 = vld [vmem:[#allocation15] sm:$0xff] (!%p5724_p4)  ;;  %v4954_v39 = vld [vmem:[#allocation15 + $0x8] sm:$0xff] (!%p5724_p4)  ;;  %v4955_v15 = vld [vmem:[#allocation15 + $0x10] sm:$0xff] (!%p5724_p4)  ;;  %v7318_v16 = vmov (!%p5724_p4), 0.0|0.0   ;;  %vm4964_vm8 = vcmask (!%p5724_p4), 261120   ;;  %vm7319_vm9 = vmmov (!%p5724_p4), 0  }
 0xada   : > { %4950 = sbr.rel (%p5724_p4) target bundleno = 3024 (0xbd0), region = 136  ;;  %6529 = vmatprep.subr.bf16.mxu1 (!%p5724_p4), %v7318_v16  ;;  %6547 = vmatprep.subr.bf16.mxu0 (!%p5724_p4), %v7318_v16  ;;  %v4969_v34 = vand.u32 (!%p5724_p4), 4294901760, %v4953_v35  ;;  %v4972_v17 = vand.u32 (!%p5724_p4), 4294901760, %v4954_v39  ;;  %v4956_v49 = vld [vmem:[#allocation15 + $0x18] sm:$0xff] (!%p5724_p4)  ;;  %v4975_v20 = vand.u32 (!%p5724_p4), 4294901760, %v4955_v15  ;;  %v7320_v24 = vmov (!%p5724_p4), 0.0  }
 0xadb   : > { %v4952_v21 = vld [vmem:[#allocation2] sm:$0xff] (!%p5724_p4)  ;;  %v4978_v40 = vand.u32 (!%p5724_p4), 4294901760, %v4956_v49  ;;  %6345 = vmatprep.mubr.msk.f32.mxu1 (!%p5724_p4), %vm7319_vm9, %v7320_v24  ;;  %6378 = vmatprep.mubr.msk.f32.mxu0 (!%p5724_p4), %vm7319_vm9, %v7320_v24  ;;  %v5725_v58 = vld [vmem:[#allocation17] ss:$0 sm:$0xff] (!%p5724_p4)  ;;  %vm5453_vm10 = vcmask (!%p5724_p4), 64512  }
 0xadc   : > { %v4966_v25 = vsel (!%p5724_p4), %vm4964_vm8, %v4952_v21, 0  ;;  %v6530_v26 = vpack.c.bf16 (!%p5724_p4), %v4972_v17, %v4969_v34  ;;  %v5049_v27 = vsub.f32 (!%p5724_p4), %v4953_v35, %v4969_v34  ;;  %v5056_v28 = vsub.f32 (!%p5724_p4), %v4954_v39, %v4972_v17 }
 0xadd   : > { %v5063_v29 = vsub.f32 (!%p5724_p4), %v4955_v15, %v4975_v20  ;;  %v5070_v30 = vsub.f32 (!%p5724_p4), %v4956_v49, %v4978_v40  ;;  %v5037_v31 = vand.u32 (!%p5724_p4), 4294901760, %v4966_v25  ;;  %v6533_v32 = vpack.c.bf16 (!%p5724_p4), %v4978_v40, %v4975_v20 }
 0xade   : > { %6531 = vmatpush3.bf16.msra.mxu1 (!%p5724_p4), %v6530_v26  ;;  %6549 = vmatpush3.bf16.msra.mxu0 (!%p5724_p4), %v6530_v26  ;;  %v5050_v33 = vand.u32 (!%p5724_p4), 4294901760, %v5049_v27  ;;  %v5057_v38 = vand.u32 (!%p5724_p4), 4294901760, %v5056_v28  ;;  %v6542_v56 = vpack.c.bf16 (!%p5724_p4), %v5056_v28, %v5049_v27 }
 0xadf   : > { %v5064_v41 = vand.u32 (!%p5724_p4), 4294901760, %v5063_v29  ;;  %6532 = vmatprep.subr.bf16.mxu1 (!%p5724_p4), %v7318_v16  ;;  %6550 = vmatprep.subr.bf16.mxu0 (!%p5724_p4), %v7318_v16  ;;  %v5038_v43 = vsub.f32 (!%p5724_p4), %v4966_v25, %v5037_v31  ;;  %v5071_v45 = vand.u32 (!%p5724_p4), 4294901760, %v5070_v30  ;;  %v6545_v57 = vpack.c.bf16 (!%p5724_p4), %v5070_v30, %v5063_v29 }
 0xae0   : > { %v5051_v18 = vsub.f32 (!%p5724_p4), %v5049_v27, %v5050_v33  ;;  %v5058_v19 = vsub.f32 (!%p5724_p4), %v5056_v28, %v5057_v38  ;;  %v6554_v6 = vpack.c.bf16 (!%p5724_p4), %v5057_v38, %v5050_v33 }
 0xae1   : > { %v5065_v22 = vsub.f32 %v5063_v29, %v5064_v41  ;;  %v5039_v23 = vand.u32 4294901760, %v5038_v43  ;;  %v5072_v36 = vsub.f32 %v5070_v30, %v5071_v45  ;;  %v6557_v54 = vpack.c.bf16 %v5071_v45, %v5064_v41 }
 0xae2   : > { %6534 = vmatpush3.bf16.msra.mxu1 %v6533_v32  ;;  %6552 = vmatpush3.bf16.msra.mxu0 %v6533_v32  ;;  %v5052_v37 = vand.u32 4294901760, %v5051_v18  ;;  %v5059_v46 = vand.u32 4294901760, %v5058_v19 }
 0xae3   : > { %v5040_v48 = vsub.f32 %v5038_v43, %v5039_v23  ;;  %6535 = vmatprep.subr.bf16.mxu1 %v7318_v16  ;;  %6553 = vmatprep.subr.bf16.mxu0 %v7318_v16  ;;  %v5066_v51 = vand.u32 4294901760, %v5065_v22  ;;  %v5073_v52 = vand.u32 4294901760, %v5072_v36 }
 0xae4   : > { %v6536_v50 = vpack.c.bf16 %v5059_v46, %v5052_v37 }
 0xae5   : > { %v5041_v53 = vand.u32 4294901760, %v5040_v48  ;;  %6379 = vmatmul.mubr.f32.vlgmr.msra.gmra.mrb[0].mxu0 %v5039_v23  ;;  %v6539_v55 = vpack.c.bf16 %v5073_v52, %v5066_v51 }
 0xae6   : > { %6555 = vmatpush3.bf16.msra.mxu0 %v6554_v6  ;;  %6389 = vmatprep.mubr.msk.f32.mxu0 %vm7319_vm9, %v7320_v24 }
 0xae7   : > { %6346 = vmatmul.mubr.f32.vlgmr.msra.gmra.mrb[0].mxu1 %v5041_v53  ;;  %6556 = vmatprep.subr.bf16.mxu0 %v7318_v16 }
 0xae8   : > { %6537 = vmatpush3.bf16.msra.mxu1 %v6536_v50  ;;  %6356 = vmatprep.mubr.msk.f32.mxu1 %vm7319_vm9, %v7320_v24 }
 0xae9   : > { %6538 = vmatprep.subr.bf16.mxu1 %v7318_v16 }
 0xaea   : > { %6558 = vmatpush3.bf16.msra.mxu0 %v6557_v54 }
 0xaeb   : > { %6559 = vmatprep.subr.bf16.mxu0 %v7318_v16 }
 0xaec   : > { %6540 = vmatpush3.bf16.msra.mxu1 %v6539_v55 }
 0xaed   : > { %6541 = vmatprep.subr.bf16.mxu1 %v7318_v16  ;;  %6390 = vmatmul.mubr.f32.vlgmr.msra.gmra.mrb[0].mxu0 %v5037_v31 }
 0xaee   : > { %6561 = vmatpush3.bf16.msra.mxu0 %v6530_v26  ;;  %6400 = vmatprep.mubr.msk.f32.mxu0 %vm7319_vm9, %v7320_v24 }
 0xaef   : > { %6357 = vmatmul.mubr.f32.vlgmr.msra.gmra.mrb[0].mxu1 %v5037_v31  ;;  %6562 = vmatprep.subr.bf16.mxu0 %v7318_v16 }
 0xaf0   : > { %6543 = vmatpush3.bf16.msra.mxu1 %v6542_v56  ;;  %6367 = vmatprep.mubr.msk.f32.mxu1 %vm7319_vm9, %v7320_v24 }
 0xaf1   : > { %6544 = vmatprep.subr.bf16.mxu1 %v7318_v16 }
 0xaf2   : > { %6564 = vmatpush3.bf16.msra.mxu0 %v6533_v32 }
 0xaf4   : > { %6546 = vmatpush3.bf16.msra.mxu1 %v6545_v57 }
 0xaf5   : > { %6401 = vmatmul.mubr.f32.vlgmr.msra.gmra.mrb[0].mxu0 %v5037_v31 }
 0xaf7   : > { %6368 = vmatmul.mubr.f32.vlgmr.msra.gmra.mrb[0].mxu1 %v5038_v43 }
 0xbc8   : > { %v5449_v13 = vpop.f32.mrb[0].mxu0 }
 0xbc9   : > { %v6402_v59 = vpop.f32.mrb[1].mxu0 }
 0xbca   : > { %v5214_v60 = vpop.f32.mrb[0].mxu1 }
 0xbcb   : > { %v6655_v61 = vadd.f32 %v5725_v58, %v5214_v60  ;;  %v6369_v62 = vpop.f32.mrb[1].mxu1 }
 0xbcd   : > { %v6656_v63 = vadd.f32 %v6655_v61, %v5449_v13 }
 0xbcf   : > { %5454 = vst.msk [vmem:[#allocation24] sm:$0xff] %vm5453_vm10, %v6656_v63 }
 0xbd0 PF: > { %s8162_s23 = sadd.s32 4294967295, %s7295_s27   ;;  %s7321_s26 = smov [#allocation24]  }
 0xbd1   : > { %p8084_p11 = scmp.eq.s32.totalorder %s8162_s23, 1  ;;  %s5471_s18 = sshll.u32 %s7321_s26, 4  ;;  %s5472_s18 = int_to_ptr.vmem [resolvable:$true] %s5471_s18 }
 0xbd2   : > { %s7215_s17 = scalar_lea.vmem %s5472_s18, 128  ;;  %s7221_s14 = scalar_lea.vmem %s5472_s18, 256 }
 0xbd3   : > { %p7216_p12 = scmp.ne.s32.totalorder %s5472_s18, %s7215_s17  ;;  %p7222_p1 = scmp.lt.s32.totalorder %s5472_s18, %s5472_s18 }
 0xbd4   : > { %p7223_p2 = scmp.lt.s32.totalorder %s7221_s14, %s7215_s17 }
 0xbd5   : > { %p7217_p13 = pnand %p7216_p12, %p8084_p11 }
 0xbd6   : > { %p7224_p5 = por %p7223_p2, %p7222_p1 }
 0xbd7   : > { %p7218_p0 = pneg %p7217_p13 }
 0xbd9   : > { %p7225_p6 = pnand %p7224_p5, %p7218_p0 }
 0xbdb   : > { %7228 = shalt.err (!%p7225_p6)
}
 0xbdc   : > { %s8164_s13 = sld [smem:[#allocation38_spill]] }
 0xbe2   : > { %s7229_s15 = scalar_lea.hbm %s8164_s13, 128 }
 0xbe3   : > { %p7230_p8 = scmp.ne.s32.totalorder %s8164_s13, %s7229_s15  ;;  %p7235_p10 = scmp.lt.u32.totalorder %s7229_s15, %s8164_s13 }
 0xbe5   : > { %p7231_p9 = pnand %p7230_p8, %p8084_p11 }
 0xbe7   : > { %p7232_p3 = pneg %p7231_p9 }
 0xbe9   : > { %p7237_p7 = pnand %p7235_p10, %p7232_p3 }
 0xbeb   : > { %7240 = shalt.err (!%p7237_p7)
}
 0xbec   : > { %6718 = dma.vmem_to_hbm [thread:$0]  (%p8084_p11), %s5472_s18, 128, %s8164_s13, [#allocation5]  }
 0xbed PF: > { %s8165_s24 = sadd.s32 4294967294, %s7295_s27   ;;  %p8166_p12 = scmp.ge.s32.totalorder %s7295_s27, 2 }
 0xbee   : > { %p6795_p4 = scmp.eq.s32.totalorder %s8165_s24, 1 }
 0xbf0   : > { %p6763_p13 = pnand %p6795_p4, %p8166_p12 }
 0xbf2   : > { %7282 = dma.done.wait (!%p6763_p13), [#allocation5], 128  }
 0xbf3   : > { %7284 = vsyncadd (!%p6763_p13), [#allocation5], 4294967168  ;;  %s35_s27 = sadd.s32 1, %s7295_s27   ;;  %s8167_s25 = sld [smem:[#allocation34_spill]] }
 0xbf4   : > { %p32_p0 = scmp.ge.s32.totalorder %s35_s27, 4   ;;  %s8168_s26 = sld [smem:[#allocation36_spill]] }
 0xbf6   :  { %34 = sbr.rel (!%p32_p0) target bundleno = 13 (0xd), region = 179 }
 0xbfd   :  { %5489 = vsyncpa [#allocation4], 1 }
 0xbfe   :  { %5491 = vsyncpa [#allocation4 + $0x1], 1 }
 0xbff   :  { %5492 = vsyncpa [#allocation7], 1 }
 0xc00   :  { %5493 = vsyncpa [#allocation10], 1 }
 0xc01   :  { %5494 = vsyncpa [#allocation13], 1 }
 0xc02   :  { %5495 = vsyncpa [#allocation16], 1 }
 0xc03   :  { %5496 = vsyncpa [#allocation19], 1 }
 0xc04   :  { %5497 = vsyncpa [#allocation22], 1 }
 0xc05   :  { %5498 = vsyncpa [#allocation5], 1 }
 0xc06   :  { %5500 = vsyncpa [#allocation5 + $0x1], 1 }

</bundles_post_ra>
